<compile_context>
chip_gen: v5e
topology: v5e:2x2
jax: 0.10.0
libtpu: 0.0.40
codegen_flags: <defaults>
</compile_context>

<pallas_src>
import functools

import jax
import jax.numpy as jnp
from jax.experimental import pallas as pl
from jax.experimental.pallas import tpu as pltpu


def vae_fwd_kernel(
    x_ref, eps_ref,
    w1_ref, b1_ref,
    w2_ref, b2_ref,
    w3_ref, b3_ref,       # fused [w31 | w32], [b31 | b32]
    w4_ref, b4_ref,
    w5_ref, b5_ref,
    w6_ref, b6_ref,
    recon_ref, mulogvar_ref,
    *, latent_dim,
):
    # MXU operand dtype follows the weight dtype (bf16 by default); all
    # accumulation and elementwise math is f32.
    cdt = w1_ref.dtype

    def dense(a, w_ref, b_ref):
        return (
            jnp.dot(a.astype(cdt), w_ref[...], preferred_element_type=jnp.float32)
            + b_ref[...]
        )

    x = x_ref[...]

    # ----- encode -----
    h1 = jnp.maximum(dense(x, w1_ref, b1_ref), 0.0)
    h2 = jnp.maximum(dense(h1, w2_ref, b2_ref), 0.0)
    mulogvar = dense(h2, w3_ref, b3_ref)          # (tile, 2*latent): [mu | logvar]
    mu = mulogvar[:, :latent_dim]
    logvar = mulogvar[:, latent_dim:]

    # ----- reparameterize: z = mu + eps * exp(0.5 * logvar) (f32, EUP exp) -----
    std = jnp.exp(0.5 * logvar)
    z = mu + eps_ref[...] * std

    # ----- decode -----
    h3 = jnp.maximum(dense(z, w4_ref, b4_ref), 0.0)
    h4 = jnp.maximum(dense(h3, w5_ref, b5_ref), 0.0)
    recon = dense(h4, w6_ref, b6_ref)

    recon_ref[...] = recon.astype(recon_ref.dtype)
    mulogvar_ref[...] = mulogvar.astype(mulogvar_ref.dtype)


def _pick_batch_tile(B):
    """Default batch tile: full MXU rows, VMEM-safe on v7x, >=2 grid steps.

    Capped at 256 (one full 256-row MXU pass on v6e/v7x; well inside v7x's
    64 MiB VMEM even with double-buffered in/out blocks), and chosen so the
    "parallel" grid axis has at least 2 steps whenever possible so v7x's two
    TensorCores both get work.
    """
    if B <= 8:
        return B
    for tile in (256, 128, 64, 32, 16, 8):
        if B % tile == 0 and B // tile >= 2:
            return tile
    return B


def vae_forward(x, eps, params, *, batch_tile=None, weight_dtype=jnp.bfloat16):
    """Fused VAE forward pass.

    x:   (B, input_dim) float32
    eps: (B, latent_dim) float32 standard-normal noise (torch.randn_like)
    params: dict of weights (in, out) float32 and biases (1, out) float32
    Returns (recon_x, mu, logvar), all float32.
    """
    B, input_dim = x.shape
    latent_dim = params["w31"].shape[1]
    first_dim = params["w1"].shape[1]
    second_dim = params["w2"].shape[1]

    if batch_tile is None:
        batch_tile = _pick_batch_tile(B)
    assert B % batch_tile == 0, (B, batch_tile)
    grid = (B // batch_tile,)

    # Fuse the mu / logvar projections into a single lane-dense matmul.
    w3 = jnp.concatenate([params["w31"], params["w32"]], axis=1)
    b3 = jnp.concatenate([params["b31"], params["b32"]], axis=1)

    # Weights in bf16 (MXU-native, half the DMA bytes); biases stay f32 since
    # they are added post-accumulation on the VPU.
    weight_args = [
        params["w1"].astype(weight_dtype), params["b1"],
        params["w2"].astype(weight_dtype), params["b2"],
        w3.astype(weight_dtype),           b3,
        params["w4"].astype(weight_dtype), params["b4"],
        params["w5"].astype(weight_dtype), params["b5"],
        params["w6"].astype(weight_dtype), params["b6"],
    ]

    # Batch-tiled specs for activations / outputs; weights use a constant
    # index_map (same full block every grid step -> fetched once, resident).
    def act_spec(feat):
        return pl.BlockSpec((batch_tile, feat), lambda i: (i, 0))

    def rep_spec(arr):
        return pl.BlockSpec(arr.shape, lambda i: (0, 0))

    in_specs = [act_spec(input_dim), act_spec(latent_dim)] + [
        rep_spec(w) for w in weight_args
    ]
    out_specs = (
        act_spec(input_dim),        # recon_x
        act_spec(2 * latent_dim),   # [mu | logvar] (single wider store stream)
    )
    out_shape = (
        jax.ShapeDtypeStruct((B, input_dim), jnp.float32),
        jax.ShapeDtypeStruct((B, 2 * latent_dim), jnp.float32),
    )

    flops = 2 * B * (
        input_dim * first_dim
        + first_dim * second_dim
        + second_dim * (2 * latent_dim)
        + latent_dim * second_dim
        + second_dim * first_dim
        + first_dim * input_dim
    )
    bytes_accessed = int(
        x.size * x.dtype.itemsize
        + eps.size * eps.dtype.itemsize
        + sum(w.size * w.dtype.itemsize for w in weight_args)
        + B * input_dim * 4            # recon_x
        + B * 2 * latent_dim * 4       # mu | logvar
    )
    cost = pl.CostEstimate(
        flops=int(flops),
        transcendentals=int(B * latent_dim),   # exp in reparameterize
        bytes_accessed=bytes_accessed,
    )

    recon, mulogvar = pl.pallas_call(
        functools.partial(vae_fwd_kernel, latent_dim=latent_dim),
        grid=grid,
        in_specs=in_specs,
        out_specs=out_specs,
        out_shape=out_shape,
        compiler_params=pltpu.CompilerParams(
            dimension_semantics=("parallel",),
            vmem_limit_bytes=32 * 1024 * 1024,
        ),
        cost_estimate=cost,
    )(x, eps, *weight_args)

    mu = mulogvar[:, :latent_dim]
    logvar = mulogvar[:, latent_dim:]
    return recon, mu, logvar


def init_params(key, input_dim, first_dim, second_dim, latent_dim):
    """Deterministic synthetic parameters. Weights stored as (in, out), f32."""
    dims = {
        "w1": (input_dim, first_dim),
        "w2": (first_dim, second_dim),
        "w31": (second_dim, latent_dim),
        "w32": (second_dim, latent_dim),
        "w4": (latent_dim, second_dim),
        "w5": (second_dim, first_dim),
        "w6": (first_dim, input_dim),
    }
    params = {}
    keys = jax.random.split(key, len(dims) * 2)
    for i, (name, (din, dout)) in enumerate(dims.items()):
        wk, bk = keys[2 * i], keys[2 * i + 1]
        scale = 1.0 / jnp.sqrt(jnp.float32(din))
        params[name] = jax.random.uniform(
            wk, (din, dout), jnp.float32, minval=-scale, maxval=scale
        )
        params[name.replace("w", "b")] = jax.random.uniform(
            bk, (1, dout), jnp.float32, minval=-scale, maxval=scale
        )
    return params


def vae_forward_ref(x, eps, params, compute_dtype=jnp.float32):
    """Pure-JAX reference. compute_dtype mirrors the kernel's MXU operand dtype."""
    def dense(a, w, b):
        return jnp.dot(
            a.astype(compute_dtype), w.astype(compute_dtype),
            preferred_element_type=jnp.float32,
        ) + b

    h1 = jax.nn.relu(dense(x, params["w1"], params["b1"]))
    h2 = jax.nn.relu(dense(h1, params["w2"], params["b2"]))
    mu = dense(h2, params["w31"], params["b31"])
    logvar = dense(h2, params["w32"], params["b32"])
    z = mu + eps * jnp.exp(0.5 * logvar)
    h3 = jax.nn.relu(dense(z, params["w4"], params["b4"]))
    h4 = jax.nn.relu(dense(h3, params["w5"], params["b5"]))
    recon = dense(h4, params["w6"], params["b6"])
    return recon, mu, logvar


if __name__ == "__main__":
    # Small shapes consistent with the module's fully-connected forward pass.
    # B=256 keeps everything tiny (<1 MB of activations) while exercising the
    # batch-tiled grid (2 steps of 128) and the megacore-parallel axis.
    B = 256
    input_dim = 256
    first_layer_dim = 128
    second_layer_dim = 64
    latent_dim = 32

    root = jax.random.PRNGKey(0)
    k_params, k_x, k_eps = jax.random.split(root, 3)

    params = init_params(k_params, input_dim, first_layer_dim,
                         second_layer_dim, latent_dim)
    x = jax.random.normal(k_x, (B, input_dim), jnp.float32)
    # eps corresponds to torch.randn_like(std) in reparameterize; generated
    # deterministically host-side and fed into the kernel.
    eps = jax.random.normal(k_eps, (B, latent_dim), jnp.float32)

    recon_x, mu, logvar = jax.block_until_ready(vae_forward(x, eps, params))

    # Check against a reference using the same mixed precision (bf16 MXU
    # operands, f32 accumulation / elementwise).
    r_m, mu_m, lv_m = vae_forward_ref(x, eps, params, compute_dtype=jnp.bfloat16)
    assert jnp.allclose(recon_x, r_m, atol=1e-2, rtol=1e-2)
    assert jnp.allclose(mu, mu_m, atol=1e-2, rtol=1e-2)
    assert jnp.allclose(logvar, lv_m, atol=1e-2, rtol=1e-2)

    # Loose semantic sanity check against full-f32 math (bf16 weight rounding).
    r_f, mu_f, lv_f = vae_forward_ref(x, eps, params)
    assert jnp.allclose(recon_x, r_f, atol=1e-1, rtol=1e-1)
    assert jnp.allclose(mu, mu_f, atol=1e-1, rtol=1e-1)
    assert jnp.allclose(logvar, lv_f, atol=1e-1, rtol=1e-1)

    print("KERNEL_OK")
</pallas_src>

<mosaic_0001>
module attributes {stable_mosaic.version = 11 : i64} {
  func.func @vae_fwd_kernel(%arg0: i32, %arg1: memref<128x256xf32, #tpu.memory_space<vmem>>, %arg2: memref<128x32xf32, #tpu.memory_space<vmem>>, %arg3: memref<256x128xbf16, #tpu.memory_space<vmem>>, %arg4: memref<1x128xf32, #tpu.memory_space<vmem>>, %arg5: memref<128x64xbf16, #tpu.memory_space<vmem>>, %arg6: memref<1x64xf32, #tpu.memory_space<vmem>>, %arg7: memref<64x64xbf16, #tpu.memory_space<vmem>>, %arg8: memref<1x64xf32, #tpu.memory_space<vmem>>, %arg9: memref<32x64xbf16, #tpu.memory_space<vmem>>, %arg10: memref<1x64xf32, #tpu.memory_space<vmem>>, %arg11: memref<64x128xbf16, #tpu.memory_space<vmem>>, %arg12: memref<1x128xf32, #tpu.memory_space<vmem>>, %arg13: memref<128x256xbf16, #tpu.memory_space<vmem>>, %arg14: memref<1x256xf32, #tpu.memory_space<vmem>>, %arg15: memref<128x256xf32, #tpu.memory_space<vmem>>, %arg16: memref<128x64xf32, #tpu.memory_space<vmem>>) attributes {dimension_semantics = [#tpu.dimension_semantics<parallel>], iteration_bounds = array<i64: 2>, scalar_prefetch = 0 : i64, scratch_operands = 0 : i64, tpu.core_type = #tpu.core_type<tc>, window_params = [{transform_indices = @transform_0, window_bounds = array<i64: 128, 256>}, {transform_indices = @transform_1, window_bounds = array<i64: 128, 32>}, {pipeline_mode = #tpu.pipeline_mode<synchronous>, transform_indices = @transform_2, window_bounds = array<i64: 256, 128>}, {pipeline_mode = #tpu.pipeline_mode<synchronous>, transform_indices = @transform_3, window_bounds = array<i64: 1, 128>}, {pipeline_mode = #tpu.pipeline_mode<synchronous>, transform_indices = @transform_4, window_bounds = array<i64: 128, 64>}, {pipeline_mode = #tpu.pipeline_mode<synchronous>, transform_indices = @transform_5, window_bounds = array<i64: 1, 64>}, {pipeline_mode = #tpu.pipeline_mode<synchronous>, transform_indices = @transform_6, window_bounds = array<i64: 64, 64>}, {pipeline_mode = #tpu.pipeline_mode<synchronous>, transform_indices = @transform_7, window_bounds = array<i64: 1, 64>}, {pipeline_mode = #tpu.pipeline_mode<synchronous>, transform_indices = @transform_8, window_bounds = array<i64: 32, 64>}, {pipeline_mode = #tpu.pipeline_mode<synchronous>, transform_indices = @transform_9, window_bounds = array<i64: 1, 64>}, {pipeline_mode = #tpu.pipeline_mode<synchronous>, transform_indices = @transform_10, window_bounds = array<i64: 64, 128>}, {pipeline_mode = #tpu.pipeline_mode<synchronous>, transform_indices = @transform_11, window_bounds = array<i64: 1, 128>}, {pipeline_mode = #tpu.pipeline_mode<synchronous>, transform_indices = @transform_12, window_bounds = array<i64: 128, 256>}, {pipeline_mode = #tpu.pipeline_mode<synchronous>, transform_indices = @transform_13, window_bounds = array<i64: 1, 256>}, {transform_indices = @transform_14, window_bounds = array<i64: 128, 256>}, {transform_indices = @transform_15, window_bounds = array<i64: 128, 64>}]} {
    %c0 = arith.constant 0 : index
    %c0_0 = arith.constant 0 : index
    %0 = vector.load %arg1[%c0, %c0_0] : memref<128x256xf32, #tpu.memory_space<vmem>>, vector<128x256xf32>
    %1 = arith.truncf %0 : vector<128x256xf32> to vector<128x256xbf16>
    %c0_1 = arith.constant 0 : index
    %c0_2 = arith.constant 0 : index
    %2 = vector.load %arg3[%c0_1, %c0_2] : memref<256x128xbf16, #tpu.memory_space<vmem>>, vector<256x128xbf16>
    %cst = arith.constant dense<0.000000e+00> : vector<128x128xf32>
    %3 = tpu.matmul %1, %2, %cst {dimension_numbers = #tpu.dot_dimension_numbers<[1], [0], [0], [1], [0, 0, 1, 1], [], []>} : vector<128x256xbf16>, vector<256x128xbf16>, vector<128x128xf32> -> vector<128x128xf32>
    %c0_3 = arith.constant 0 : index
    %c0_4 = arith.constant 0 : index
    %4 = vector.load %arg4[%c0_3, %c0_4] : memref<1x128xf32, #tpu.memory_space<vmem>>, vector<1x128xf32>
    %5 = vector.broadcast %4 : vector<1x128xf32> to vector<128x128xf32>
    %6 = arith.addf %3, %5 : vector<128x128xf32>
    %cst_5 = arith.constant 0.000000e+00 : f32
    %7 = vector.broadcast %cst_5 : f32 to vector<128x128xf32>
    %8 = arith.maximumf %6, %7 : vector<128x128xf32>
    %9 = arith.truncf %8 : vector<128x128xf32> to vector<128x128xbf16>
    %c0_6 = arith.constant 0 : index
    %c0_7 = arith.constant 0 : index
    %10 = vector.load %arg5[%c0_6, %c0_7] : memref<128x64xbf16, #tpu.memory_space<vmem>>, vector<128x64xbf16>
    %cst_8 = arith.constant dense<0.000000e+00> : vector<128x64xf32>
    %11 = tpu.matmul %9, %10, %cst_8 {dimension_numbers = #tpu.dot_dimension_numbers<[1], [0], [0], [1], [0, 0, 1, 1], [], []>} : vector<128x128xbf16>, vector<128x64xbf16>, vector<128x64xf32> -> vector<128x64xf32>
    %c0_9 = arith.constant 0 : index
    %c0_10 = arith.constant 0 : index
    %12 = vector.load %arg6[%c0_9, %c0_10] : memref<1x64xf32, #tpu.memory_space<vmem>>, vector<1x64xf32>
    %13 = vector.broadcast %12 : vector<1x64xf32> to vector<128x64xf32>
    %14 = arith.addf %11, %13 : vector<128x64xf32>
    %cst_11 = arith.constant 0.000000e+00 : f32
    %15 = vector.broadcast %cst_11 : f32 to vector<128x64xf32>
    %16 = arith.maximumf %14, %15 : vector<128x64xf32>
    %17 = arith.truncf %16 : vector<128x64xf32> to vector<128x64xbf16>
    %c0_12 = arith.constant 0 : index
    %c0_13 = arith.constant 0 : index
    %18 = vector.load %arg7[%c0_12, %c0_13] : memref<64x64xbf16, #tpu.memory_space<vmem>>, vector<64x64xbf16>
    %cst_14 = arith.constant dense<0.000000e+00> : vector<128x64xf32>
    %19 = tpu.matmul %17, %18, %cst_14 {dimension_numbers = #tpu.dot_dimension_numbers<[1], [0], [0], [1], [0, 0, 1, 1], [], []>} : vector<128x64xbf16>, vector<64x64xbf16>, vector<128x64xf32> -> vector<128x64xf32>
    %c0_15 = arith.constant 0 : index
    %c0_16 = arith.constant 0 : index
    %20 = vector.load %arg8[%c0_15, %c0_16] : memref<1x64xf32, #tpu.memory_space<vmem>>, vector<1x64xf32>
    %21 = vector.broadcast %20 : vector<1x64xf32> to vector<128x64xf32>
    %22 = arith.addf %19, %21 : vector<128x64xf32>
    %23 = vector.extract_strided_slice %22 {offsets = [0, 0], sizes = [128, 32], strides = [1, 1]} : vector<128x64xf32> to vector<128x32xf32>
    %24 = vector.extract_strided_slice %22 {offsets = [0, 32], sizes = [128, 32], strides = [1, 1]} : vector<128x64xf32> to vector<128x32xf32>
    %cst_17 = arith.constant 5.000000e-01 : f32
    %25 = vector.broadcast %cst_17 : f32 to vector<128x32xf32>
    %26 = arith.mulf %25, %24 : vector<128x32xf32>
    %27 = math.exp %26 : vector<128x32xf32>
    %c0_18 = arith.constant 0 : index
    %c0_19 = arith.constant 0 : index
    %28 = vector.load %arg2[%c0_18, %c0_19] : memref<128x32xf32, #tpu.memory_space<vmem>>, vector<128x32xf32>
    %29 = arith.mulf %28, %27 : vector<128x32xf32>
    %30 = arith.addf %23, %29 : vector<128x32xf32>
    %31 = arith.truncf %30 : vector<128x32xf32> to vector<128x32xbf16>
    %c0_20 = arith.constant 0 : index
    %c0_21 = arith.constant 0 : index
    %32 = vector.load %arg9[%c0_20, %c0_21] : memref<32x64xbf16, #tpu.memory_space<vmem>>, vector<32x64xbf16>
    %cst_22 = arith.constant dense<0.000000e+00> : vector<128x64xf32>
    %33 = tpu.matmul %31, %32, %cst_22 {dimension_numbers = #tpu.dot_dimension_numbers<[1], [0], [0], [1], [0, 0, 1, 1], [], []>} : vector<128x32xbf16>, vector<32x64xbf16>, vector<128x64xf32> -> vector<128x64xf32>
    %c0_23 = arith.constant 0 : index
    %c0_24 = arith.constant 0 : index
    %34 = vector.load %arg10[%c0_23, %c0_24] : memref<1x64xf32, #tpu.memory_space<vmem>>, vector<1x64xf32>
    %35 = vector.broadcast %34 : vector<1x64xf32> to vector<128x64xf32>
    %36 = arith.addf %33, %35 : vector<128x64xf32>
    %cst_25 = arith.constant 0.000000e+00 : f32
    %37 = vector.broadcast %cst_25 : f32 to vector<128x64xf32>
    %38 = arith.maximumf %36, %37 : vector<128x64xf32>
    %39 = arith.truncf %38 : vector<128x64xf32> to vector<128x64xbf16>
    %c0_26 = arith.constant 0 : index
    %c0_27 = arith.constant 0 : index
    %40 = vector.load %arg11[%c0_26, %c0_27] : memref<64x128xbf16, #tpu.memory_space<vmem>>, vector<64x128xbf16>
    %cst_28 = arith.constant dense<0.000000e+00> : vector<128x128xf32>
    %41 = tpu.matmul %39, %40, %cst_28 {dimension_numbers = #tpu.dot_dimension_numbers<[1], [0], [0], [1], [0, 0, 1, 1], [], []>} : vector<128x64xbf16>, vector<64x128xbf16>, vector<128x128xf32> -> vector<128x128xf32>
    %c0_29 = arith.constant 0 : index
    %c0_30 = arith.constant 0 : index
    %42 = vector.load %arg12[%c0_29, %c0_30] : memref<1x128xf32, #tpu.memory_space<vmem>>, vector<1x128xf32>
    %43 = vector.broadcast %42 : vector<1x128xf32> to vector<128x128xf32>
    %44 = arith.addf %41, %43 : vector<128x128xf32>
    %cst_31 = arith.constant 0.000000e+00 : f32
    %45 = vector.broadcast %cst_31 : f32 to vector<128x128xf32>
    %46 = arith.maximumf %44, %45 : vector<128x128xf32>
    %47 = arith.truncf %46 : vector<128x128xf32> to vector<128x128xbf16>
    %c0_32 = arith.constant 0 : index
    %c0_33 = arith.constant 0 : index
    %48 = vector.load %arg13[%c0_32, %c0_33] : memref<128x256xbf16, #tpu.memory_space<vmem>>, vector<128x256xbf16>
    %cst_34 = arith.constant dense<0.000000e+00> : vector<128x256xf32>
    %49 = tpu.matmul %47, %48, %cst_34 {dimension_numbers = #tpu.dot_dimension_numbers<[1], [0], [0], [1], [0, 0, 1, 1], [], []>} : vector<128x128xbf16>, vector<128x256xbf16>, vector<128x256xf32> -> vector<128x256xf32>
    %c0_35 = arith.constant 0 : index
    %c0_36 = arith.constant 0 : index
    %50 = vector.load %arg14[%c0_35, %c0_36] : memref<1x256xf32, #tpu.memory_space<vmem>>, vector<1x256xf32>
    %51 = vector.broadcast %50 : vector<1x256xf32> to vector<128x256xf32>
    %52 = arith.addf %49, %51 : vector<128x256xf32>
    %c0_37 = arith.constant 0 : index
    %c0_38 = arith.constant 0 : index
    %53 = vector.load %arg15[%c0_37, %c0_38] : memref<128x256xf32, #tpu.memory_space<vmem>>, vector<128x256xf32>
    tpu.vector_store %arg15[%c0_37, %c0_38], %52 {strides = array<i32>} : memref<128x256xf32, #tpu.memory_space<vmem>>, vector<128x256xf32>,
    %c0_39 = arith.constant 0 : index
    %c0_40 = arith.constant 0 : index
    %54 = vector.load %arg16[%c0_39, %c0_40] : memref<128x64xf32, #tpu.memory_space<vmem>>, vector<128x64xf32>
    tpu.vector_store %arg16[%c0_39, %c0_40], %22 {strides = array<i32>} : memref<128x64xf32, #tpu.memory_space<vmem>>, vector<128x64xf32>,
    return
  }
  func.func @transform_0(%arg0: i32) -> (i32, i32) {
    %c0_i32 = arith.constant 0 : i32
    %c0_i32_0 = arith.constant 0 : i32
    return %arg0, %c0_i32 : i32, i32
  }
  func.func @transform_1(%arg0: i32) -> (i32, i32) {
    %c0_i32 = arith.constant 0 : i32
    %c0_i32_0 = arith.constant 0 : i32
    return %arg0, %c0_i32 : i32, i32
  }
  func.func @transform_2(%arg0: i32) -> (i32, i32) {
    %c0_i32 = arith.constant 0 : i32
    %c0_i32_0 = arith.constant 0 : i32
    %c0_i32_1 = arith.constant 0 : i32
    return %c0_i32, %c0_i32_0 : i32, i32
  }
  func.func @transform_3(%arg0: i32) -> (i32, i32) {
    %c0_i32 = arith.constant 0 : i32
    %c0_i32_0 = arith.constant 0 : i32
    %c0_i32_1 = arith.constant 0 : i32
    return %c0_i32, %c0_i32_0 : i32, i32
  }
  func.func @transform_4(%arg0: i32) -> (i32, i32) {
    %c0_i32 = arith.constant 0 : i32
    %c0_i32_0 = arith.constant 0 : i32
    %c0_i32_1 = arith.constant 0 : i32
    return %c0_i32, %c0_i32_0 : i32, i32
  }
  func.func @transform_5(%arg0: i32) -> (i32, i32) {
    %c0_i32 = arith.constant 0 : i32
    %c0_i32_0 = arith.constant 0 : i32
    %c0_i32_1 = arith.constant 0 : i32
    return %c0_i32, %c0_i32_0 : i32, i32
  }
  func.func @transform_6(%arg0: i32) -> (i32, i32) {
    %c0_i32 = arith.constant 0 : i32
    %c0_i32_0 = arith.constant 0 : i32
    %c0_i32_1 = arith.constant 0 : i32
    return %c0_i32, %c0_i32_0 : i32, i32
  }
  func.func @transform_7(%arg0: i32) -> (i32, i32) {
    %c0_i32 = arith.constant 0 : i32
    %c0_i32_0 = arith.constant 0 : i32
    %c0_i32_1 = arith.constant 0 : i32
    return %c0_i32, %c0_i32_0 : i32, i32
  }
  func.func @transform_8(%arg0: i32) -> (i32, i32) {
    %c0_i32 = arith.constant 0 : i32
    %c0_i32_0 = arith.constant 0 : i32
    %c0_i32_1 = arith.constant 0 : i32
    return %c0_i32, %c0_i32_0 : i32, i32
  }
  func.func @transform_9(%arg0: i32) -> (i32, i32) {
    %c0_i32 = arith.constant 0 : i32
    %c0_i32_0 = arith.constant 0 : i32
    %c0_i32_1 = arith.constant 0 : i32
    return %c0_i32, %c0_i32_0 : i32, i32
  }
  func.func @transform_10(%arg0: i32) -> (i32, i32) {
    %c0_i32 = arith.constant 0 : i32
    %c0_i32_0 = arith.constant 0 : i32
    %c0_i32_1 = arith.constant 0 : i32
    return %c0_i32, %c0_i32_0 : i32, i32
  }
  func.func @transform_11(%arg0: i32) -> (i32, i32) {
    %c0_i32 = arith.constant 0 : i32
    %c0_i32_0 = arith.constant 0 : i32
    %c0_i32_1 = arith.constant 0 : i32
    return %c0_i32, %c0_i32_0 : i32, i32
  }
  func.func @transform_12(%arg0: i32) -> (i32, i32) {
    %c0_i32 = arith.constant 0 : i32
    %c0_i32_0 = arith.constant 0 : i32
    %c0_i32_1 = arith.constant 0 : i32
    return %c0_i32, %c0_i32_0 : i32, i32
  }
  func.func @transform_13(%arg0: i32) -> (i32, i32) {
    %c0_i32 = arith.constant 0 : i32
    %c0_i32_0 = arith.constant 0 : i32
    %c0_i32_1 = arith.constant 0 : i32
    return %c0_i32, %c0_i32_0 : i32, i32
  }
  func.func @transform_14(%arg0: i32) -> (i32, i32) {
    %c0_i32 = arith.constant 0 : i32
    %c0_i32_0 = arith.constant 0 : i32
    return %arg0, %c0_i32 : i32, i32
  }
  func.func @transform_15(%arg0: i32) -> (i32, i32) {
    %c0_i32 = arith.constant 0 : i32
    %c0_i32_0 = arith.constant 0 : i32
    return %arg0, %c0_i32 : i32, i32
  }
}

</mosaic_0001>

<bundles_post_ra>
// kernel: tpu_custom_call.1
= control target key start
LH: loop header
LB: loop body
LE: loop exit
PB: predicated region body
PF: predicated region fallthrough
CT: control target
= control target key end

     0   :  { %s3190_s0 = inlined_call_operand.hbm [shape: f32[256,256], index: 0, kind: input, shape index: {}]   ;;  %s3191_s1 = inlined_call_operand.vmem [shape: f32[256,32], index: 1, kind: input, shape index: {}]   ;;  %s3192_s2 = inlined_call_operand.vmem [shape: bf16[256,128], index: 2, kind: input, shape index: {}]   ;;  %s3193_s3 = inlined_call_operand.vmem [shape: f32[1,128], index: 3, kind: input, shape index: {}]   ;;  %s3194_s4 = inlined_call_operand.vmem [shape: bf16[128,64], index: 4, kind: input, shape index: {}]   ;;  %s3195_s5 = inlined_call_operand.vmem [shape: f32[1,64], index: 5, kind: input, shape index: {}]   ;;  %s3196_s6 = inlined_call_operand.vmem [shape: bf16[64,64], index: 6, kind: input, shape index: {}]   ;;  %s3197_s7 = inlined_call_operand.vmem [shape: f32[1,64], index: 7, kind: input, shape index: {}]   ;;  %s3198_s8 = inlined_call_operand.vmem [shape: bf16[32,64], index: 8, kind: input, shape index: {}]   ;;  %s3199_s9 = inlined_call_operand.vmem [shape: f32[1,64], index: 9, kind: input, shape index: {}]   ;;  %s3200_s10 = inlined_call_operand.vmem [shape: bf16[64,128], index: 10, kind: input, shape index: {}]   ;;  %s3201_s11 = inlined_call_operand.vmem [shape: f32[1,128], index: 11, kind: input, shape index: {}]   ;;  %s3202_s12 = inlined_call_operand.vmem [shape: bf16[128,256], index: 12, kind: input, shape index: {}]   ;;  %s3203_s13 = inlined_call_operand.vmem [shape: f32[1,256], index: 13, kind: input, shape index: {}]   ;;  %s3204_s14 = inlined_call_operand.hbm [shape: f32[256,256], index: 14, kind: output, shape index: {0}]   ;;  %s3205_s15 = inlined_call_operand.vmem [shape: f32[256,64], index: 15, kind: output, shape index: {1}]  }
   0x1   :  { %3214 = sst [smem:[#allocation14_spill]] %s3190_s0 }
   0x2   :  { %3215 = sst [smem:[#allocation15_spill]] %s3201_s11 }
   0x3   :  { %3216 = sst [smem:[#allocation16_spill]] %s3203_s13 }
   0x4   :  { %3217 = sst [smem:[#allocation17_spill]] %s3204_s14 }
   0x5   :  { %21 = vsyncpa [#allocation3], 0 }
   0x6   :  { %23 = vsyncpa [#allocation3 + $0x1], 0 }
   0x7   :  { %24 = vsyncpa [#allocation4], 0 }
   0x8   :  { %26 = vsyncpa [#allocation4 + $0x1], 0  ;;  %s2480_s18 = smov 0   ;;  %s2482_s19 = smov 0  }
   0x9   :  { %s2484_s20 = smov 0   ;;  %s2486_s21 = smov 0  }
   0xa LB: > { %3218 = sst [smem:[#allocation8_spill]] %s2381_s18  ;;  %s2501_s22 = sadd.s32 4294967295, %s2393_s21   ;;  %s2393_s21 = sphi %s2486_s21, %s3237_s21   ;;  %s2389_s20 = sphi %s2484_s20, %s3239_s20   ;;  %s2385_s19 = sphi %s2482_s19, %s3241_s19   ;;  %s2381_s18 = sphi %s2480_s18, %s3240_s18  }
   0xb   : > { %3219 = sst [smem:[#allocation9_spill]] %s2389_s20  ;;  %s1911_s23 = sadd.s32 4294967294, %s2393_s21  }
   0xc   : > { %s2505_s24 = sadd.s32 1, %s2393_s21   ;;  %s39_s25 = sadd.s32 1, %s2389_s20 }
   0xd   : > { %3220 = sst [smem:[#allocation10_spill]] %s2505_s24  ;;  %s36_s26 = ssub.s32 %s2393_s21, %s2505_s24 }
   0xe   : > { %p46_p0 = scmp.ne.s32.totalorder %s2389_s20, %s2385_s19  ;;  %p37_p1 = scmp.eq.s32.totalorder %s36_s26, 0 }
   0xf   : > { %p47_p2 = scmp.eq.s32.totalorder %s2393_s21, 0  ;;  %p52_p3 = scmp.ne.s32.totalorder %s2385_s19, %s2381_s18 }
  0x10   : > { %p53_p4 = scmp.eq.s32.totalorder %s2501_s22, 0  ;;  %p354_p7 = scmp.eq.s32.totalorder %s2501_s22, 1 }
  0x11   : > { %s2517_s27 = scalar_select %p37_p1, %s2389_s20, %s39_s25  }
  0x12   : > { %p2519_p5 = por %p47_p2, %p46_p0  ;;  %p2523_p6 = por %p53_p4, %p52_p3 }
  0x13   : > { %3221 = sst [smem:[#allocation11_spill]] %s2517_s27  ;;  %p360_p8 = scmp.eq.s32.totalorder %s1911_s23, 1 }
  0x14   : > { %p2221_p10 = scmp.lt.s32.totalorder %s2393_s21, 2  ;;  %p2530_p11 = por %p354_p7, %p46_p0 }
  0x15   : > { %p2534_p12 = por %p360_p8, %p52_p3  ;;  %s442_s17 = sand.u32 1, %s2389_s20  }
  0x16   : > { %s3224_s30 = scalar_select %p2530_p11, 1, 0 }
  0x17   : > { %s3226_s16 = scalar_select %p2534_p12, 1, 0 }
  0x18   : > { %3225 = sst [smem:[#allocation12_spill]] %s3224_s30  ;;  %s2156_s25 = sshll.u32 %s2393_s21, 8 }
  0x19   : > { %3227 = sst [smem:[#allocation13_spill]] %s3226_s16  ;;  %s1914_s26 = sshll.u32 %s442_s17, 8 }
  0x1a   : > { %s3228_s0 = sld [smem:[#allocation14_spill]]  ;;  %s446_s23 = scalar_lea.vmem [#allocation2], %s1914_s26 }
  0x1b   : > { %s455_s13 = sshll.u32 %s446_s23, 4  ;;  %p2545_p13 = pnand %p2221_p10, %p2519_p5  ;;  %s456_s13 = int_to_ptr.vmem [resolvable:$true] %s455_s13 }
  0x1c   : > { %p1918_p0 = scmp.ge.s32.totalorder %s2393_s21, 1  ;;  %p472_p1 = scmp.lt.s32.totalorder %s2393_s21, 3 }
  0x1d   : > { %s443_s20 = scalar_lea.sflag [#allocation3], %s442_s17  ;;  %p2301_p3 = pneg %p2545_p13 }
  0x20   : > { %s452_s18 = scalar_lea.hbm %s3228_s0, %s2156_s25  ;;  %s2304_s27 = scalar_lea.hbm %s3228_s0, 512 }
  0x21   : > { %s453_s14 = sshll.u32 %s452_s18, 4  ;;  %s454_s14 = int_to_ptr.hbm [resolvable:$true] %s453_s14 }
  0x22   : > { %s2297_s16 = sshra.s32 %s454_s14, 4  ;;  %s2298_s16 = int_to_ptr.hbm [resolvable:$true] %s2297_s16 }
  0x23   : > { %s2299_s30 = scalar_lea.hbm %s2298_s16, 256  ;;  %p2305_p5 = scmp.lt.s32.totalorder %s2298_s16, %s3228_s0 }
  0x24   : > { %p2300_p2 = scmp.ne.s32.totalorder %s2298_s16, %s2299_s30  ;;  %p2306_p8 = scmp.lt.s32.totalorder %s2304_s27, %s2299_s30 }
  0x26   : > { %p2302_p4 = pnand %p2301_p3, %p2300_p2  ;;  %p2307_p10 = por %p2306_p8, %p2305_p5 }
  0x28   : > { %p2303_p7 = pneg %p2302_p4 }
  0x2a   : > { %p2308_p9 = pnand %p2307_p10, %p2303_p7 }
  0x2c   : > { %2311 = shalt.err (!%p2308_p9)
}
  0x2d   : > { %s2395_s17 = smov 256   ;;  %s2396_s26 = smov 16  }
  0x2e   : > { %2216 = dma.hbm_to_vmem [thread:$0]  (!%p2545_p13), %s454_s14, 4096, %s456_s13, %s443_s20, %s2395_s17, %s2395_s17, %s2396_s26  }
  0x2f   : > { %p473_p2 = pnand %p1918_p0, %p472_p1 }
  0x30   : > { %s2566_s23 = sand.u32 (!%p473_p2), 1, %s2385_s19  }
  0x31   : > { %476 = sbr.rel (%p473_p2) target bundleno = 1193 (0x4a9), region = 76  ;;  %s1919_s30 = sshll.u32 (!%p473_p2), %s2566_s23, 8 }
  0x32   : > { %s479_s16 = scalar_lea.sflag (!%p473_p2), [#allocation3], %s2566_s23  ;;  %s2572_s18 = scalar_lea.vmem (!%p473_p2), [#allocation2], %s1919_s30 }
  0x36   : > { %2372 = dma.done.wait (%p2523_p6), %s479_s16, 4096  }
  0x37   : > { %2374 = vsyncadd (%p2523_p6), %s479_s16, 4294963200  ;;  %v2164_v0 = vld [vmem:[%s3192_s2 + $0x38] sm:$0xff]  ;;  %v2163_v2 = vld [vmem:[%s3192_s2 + $0x30] sm:$0xff]  ;;  %vm1034_vm0 = vcmask 523264   ;;  %s1921_s13 = sshll.u32 %s2501_s22, 4  ;;  %s2397_s25 = smov 96  }
  0x38   : > { %v2172_v1 = vld [vmem:[%s3192_s2 + $0x78] sm:$0xff]  ;;  %735 = vmatpush.bf16.msra.mxu0 %v2164_v0  ;;  %v2171_v3 = vld [vmem:[%s3192_s2 + $0x70] sm:$0xff]  ;;  %v2162_v4 = vld [vmem:[%s3192_s2 + $0x28] sm:$0xff]  ;;  %p542_p6 = scmp.lt.s32.totalorder %s1921_s13, 31  ;;  %vm1296_vm1 = vcmask 261120   ;;  %s3230_s16 = sld [smem:[#allocation15_spill]] }
  0x39   : > { %784 = vmatpush.bf16.msra.mxu1 %v2172_v1  ;;  %v2170_v5 = vld [vmem:[%s3192_s2 + $0x68] sm:$0xff]  ;;  %v2161_v6 = vld [vmem:[%s3192_s2 + $0x20] sm:$0xff]  ;;  %v2160_v8 = vld [vmem:[%s3192_s2 + $0x18] sm:$0xff]  ;;  %s3232_s27 = sld [smem:[#allocation17_spill]] }
  0x3a   : > { %v2169_v7 = vld [vmem:[%s3192_s2 + $0x60] sm:$0xff]  ;;  %v2168_v9 = vld [vmem:[%s3192_s2 + $0x58] sm:$0xff]  ;;  %v2159_v10 = vld [vmem:[%s3192_s2 + $0x10] sm:$0xff]  ;;  %s3243_s13 = smov (!%p542_p6, %s1921_s13), 31 }
  0x3b   : > { %v2167_v11 = vld [vmem:[%s3192_s2 + $0x50] sm:$0xff]  ;;  %v2158_v12 = vld [vmem:[%s3192_s2 + $0x8] sm:$0xff]  ;;  %v2157_v14 = vld [vmem:[%s3192_s2] sm:$0xff] }
  0x3c   : > { %736 = vmatpush.bf16.msra.mxu0 %v2163_v2  ;;  %v2166_v13 = vld [vmem:[%s3192_s2 + $0x48] sm:$0xff]  ;;  %v2165_v15 = vld [vmem:[%s3192_s2 + $0x40] sm:$0xff]  ;;  %v557_v17 = vld [vmem:[%s2572_s18 + $0x10] sm:$0xff] }
  0x3d   : > { %785 = vmatpush.bf16.msra.mxu1 %v2171_v3  ;;  %v555_v16 = vld [vmem:[%s2572_s18] sm:$0xff]  ;;  %v556_v18 = vld [vmem:[%s2572_s18 + $0x8] sm:$0xff]  ;;  %v558_v19 = vld [vmem:[%s2572_s18 + $0x18] sm:$0xff] }
  0x3e   : > { %v587_v20 = vpack.c.bf16 %v557_v17, %v555_v16  ;;  %v588_v21 = vpack.c.bf16 %v558_v19, %v556_v18  ;;  %v559_v22 = vld [vmem:[%s2572_s18 + $0x20] sm:$0xff]  ;;  %v561_v23 = vld [vmem:[%s2572_s18 + $0x30] sm:$0xff]  ;;  %v560_v24 = vld [vmem:[%s2572_s18 + $0x28] sm:$0xff] }
  0x3f   : > { %v562_v25 = vld [vmem:[%s2572_s18 + $0x38] sm:$0xff]  ;;  %v589_v26 = vpack.c.bf16 %v561_v23, %v559_v22  ;;  %v563_v28 = vld [vmem:[%s2572_s18 + $0x40] sm:$0xff]  ;;  %v565_v29 = vld [vmem:[%s2572_s18 + $0x50] sm:$0xff] }
  0x40   : > { %737 = vmatpush.bf16.msra.mxu0 %v2162_v4  ;;  %v590_v27 = vpack.c.bf16 %v562_v25, %v560_v24  ;;  %v564_v30 = vld [vmem:[%s2572_s18 + $0x48] sm:$0xff]  ;;  %v566_v31 = vld [vmem:[%s2572_s18 + $0x58] sm:$0xff]  ;;  %v591_v32 = vpack.c.bf16 %v565_v29, %v563_v28  ;;  %v567_v34 = vld [vmem:[%s2572_s18 + $0x60] sm:$0xff] }
  0x41   : > { %786 = vmatpush.bf16.msra.mxu1 %v2170_v5  ;;  %v592_v33 = vpack.c.bf16 %v566_v31, %v564_v30  ;;  %v569_v35 = vld [vmem:[%s2572_s18 + $0x70] sm:$0xff]  ;;  %v568_v36 = vld [vmem:[%s2572_s18 + $0x68] sm:$0xff]  ;;  %v570_v37 = vld [vmem:[%s2572_s18 + $0x78] sm:$0xff] }
  0x42   : > { %v593_v38 = vpack.c.bf16 %v569_v35, %v567_v34  ;;  %v594_v39 = vpack.c.bf16 %v570_v37, %v568_v36  ;;  %v571_v40 = vld [vmem:[%s2572_s18 + $0x80] sm:$0xff]  ;;  %v573_v41 = vld [vmem:[%s2572_s18 + $0x90] sm:$0xff]  ;;  %v572_v42 = vld [vmem:[%s2572_s18 + $0x88] sm:$0xff] }
  0x43   : > { %v574_v43 = vld [vmem:[%s2572_s18 + $0x98] sm:$0xff]  ;;  %v595_v44 = vpack.c.bf16 %v573_v41, %v571_v40  ;;  %v575_v47 = vld [vmem:[%s2572_s18 + $0xa0] sm:$0xff]  ;;  %v577_v48 = vld [vmem:[%s2572_s18 + $0xb0] sm:$0xff] }
  0x44   : > { %738 = vmatpush.bf16.msra.mxu0 %v2161_v6  ;;  %v596_v45 = vpack.c.bf16 %v574_v43, %v572_v42  ;;  %v2180_v46 = vld [vmem:[%s3194_s4 + $0x38] sm:$0xff]  ;;  %v576_v49 = vld [vmem:[%s2572_s18 + $0xa8] sm:$0xff]  ;;  %v597_v51 = vpack.c.bf16 %v577_v48, %v575_v47  ;;  %v2179_v53 = vld [vmem:[%s3194_s4 + $0x30] sm:$0xff] }
  0x45   : > { %787 = vmatpush.bf16.msra.mxu1 %v2169_v7  ;;  %925 = vmatpush.bf16.msra.mxu2 %v2180_v46  ;;  %v578_v50 = vld [vmem:[%s2572_s18 + $0xb8] sm:$0xff]  ;;  %v2178_v54 = vld [vmem:[%s3194_s4 + $0x28] sm:$0xff]  ;;  %v2177_v55 = vld [vmem:[%s3194_s4 + $0x20] sm:$0xff] }
  0x46   : > { %v598_v52 = vpack.c.bf16 %v578_v50, %v576_v49  ;;  %v579_v56 = vld [vmem:[%s2572_s18 + $0xc0] sm:$0xff]  ;;  %v581_v57 = vld [vmem:[%s2572_s18 + $0xd0] sm:$0xff]  ;;  %v580_v58 = vld [vmem:[%s2572_s18 + $0xc8] sm:$0xff] }
  0x47   : > { %v582_v59 = vld [vmem:[%s2572_s18 + $0xd8] sm:$0xff]  ;;  %v599_v60 = vpack.c.bf16 %v581_v57, %v579_v56  ;;  %v2175_v63 = vld [vmem:[%s3194_s4 + $0x10] sm:$0xff]  ;;  %v2174_v0 = vld [vmem:[%s3194_s4 + $0x8] sm:$0xff] }
  0x48   : > { %739 = vmatpush.bf16.msra.mxu0 %v2160_v8  ;;  %v600_v61 = vpack.c.bf16 %v582_v59, %v580_v58  ;;  %v2176_v62 = vld [vmem:[%s3194_s4 + $0x18] sm:$0xff]  ;;  %v583_v1 = vld [vmem:[%s2572_s18 + $0xe0] sm:$0xff]  ;;  %v585_v2 = vld [vmem:[%s2572_s18 + $0xf0] sm:$0xff] }
  0x49   : > { %788 = vmatpush.bf16.msra.mxu1 %v2168_v9  ;;  %926 = vmatpush.bf16.msra.mxu2 %v2179_v53  ;;  %v584_v3 = vld [vmem:[%s2572_s18 + $0xe8] sm:$0xff]  ;;  %v586_v4 = vld [vmem:[%s2572_s18 + $0xf8] sm:$0xff]  ;;  %v2173_v5 = vld [vmem:[%s3194_s4] sm:$0xff]  ;;  %v601_v6 = vpack.c.bf16 %v585_v2, %v583_v1  ;;  %s1922_s18 = sshll.u32 %s3243_s13, 3  ;;  %s3089_s13 = scalar_lea.vmem [#allocation5], %s1919_s30 }
  0x4a   : > { %v602_v7 = vpack.c.bf16 %v586_v4, %v584_v3  ;;  %s2743_s28 = scalar_lea.vmem %s3205_s15, %s1922_s18  ;;  %s2883_s20 = scalar_lea.vmem %s3191_s1, %s1922_s18 }
  0x4b   : > { %s2208_s30 = sshll.u32 %s2501_s22, 8  ;;  %s1794_s29 = sshll.u32 %s3089_s13, 4  ;;  %s1795_s29 = int_to_ptr.vmem [resolvable:$true] %s1794_s29 }
  0x4c   : > { %740 = vmatpush.bf16.msra.mxu0 %v2159_v10  ;;  %v2685_v10 = vld [vmem:[%s3193_s3] ss:$0 sm:$0xff]  ;;  %s1776_s22 = scalar_lea.sflag [#allocation4], %s2566_s23 }
  0x4d   : > { %789 = vmatpush.bf16.msra.mxu1 %v2167_v11  ;;  %927 = vmatpush.bf16.msra.mxu2 %v2178_v54 }
  0x50   : > { %741 = vmatpush.bf16.msra.mxu0 %v2158_v12 }
  0x51   : > { %790 = vmatpush.bf16.msra.mxu1 %v2166_v13  ;;  %928 = vmatpush.bf16.msra.mxu2 %v2177_v55 }
  0x54   : > { %742 = vmatpush.bf16.msra.mxu0 %v2157_v14 }
  0x55   : > { %791 = vmatpush.bf16.msra.mxu1 %v2165_v15  ;;  %929 = vmatpush.bf16.msra.mxu2 %v2176_v62 }
  0x57   : > { %743 = vmatmul.bf16.vlgmr.msra.gmra.mxu0 %v587_v20 }
  0x58   : > { %792 = vmatmul.bf16.vlgmr.msra.gmra.mxu1 %v588_v21 }
  0x59   : > { %930 = vmatpush.bf16.msra.mxu2 %v2175_v63 }
  0x5d   : > { %931 = vmatpush.bf16.msra.mxu2 %v2174_v0 }
  0x61   : > { %932 = vmatpush.bf16.msra.mxu2 %v2173_v5 }
  0x67   : > { %748 = vmatmul.bf16.gmra.mxu0 %v589_v26 }
  0x68   : > { %797 = vmatmul.bf16.gmra.mxu1 %v590_v27 }
  0x77   : > { %753 = vmatmul.bf16.gmra.mxu0 %v591_v32 }
  0x78   : > { %802 = vmatmul.bf16.gmra.mxu1 %v592_v33 }
  0x87   : > { %758 = vmatmul.bf16.gmra.mxu0 %v593_v38 }
  0x88   : > { %807 = vmatmul.bf16.gmra.mxu1 %v594_v39 }
  0x97   : > { %763 = vmatmul.bf16.gmra.mxu0 %v595_v44 }
  0x98   : > { %812 = vmatmul.bf16.gmra.mxu1 %v596_v45 }
  0xa7   : > { %768 = vmatmul.bf16.gmra.mxu0 %v597_v51 }
  0xa8   : > { %817 = vmatmul.bf16.gmra.mxu1 %v598_v52 }
  0xb7   : > { %773 = vmatmul.bf16.gmra.mxu0 %v599_v60 }
  0xb8   : > { %822 = vmatmul.bf16.gmra.mxu1 %v600_v61 }
  0xc7   : > { %778 = vmatmul.bf16.gmra.mxu0 %v601_v6 }
  0xc8   : > { %827 = vmatmul.bf16.gmra.mxu1 %v602_v7 }
  0xd4   : > { %v744_v8 = vpop.f32.mrf.mxu0 }
  0xd5   : > { %v793_v9 = vpop.f32.mrf.mxu1  ;;  %v745_v11 = vadd.f32 %v2685_v10, %v744_v8 }
  0xd7   : > { %v794_v14 = vadd.f32 %v793_v9, %v745_v11 }
  0xd9   : > { %v833_v17 = vmax.f32 %v794_v14, 0.0 }
  0xdc   : > { %v746_v12 = vpop.f32.mrf.mxu0 }
  0xdd   : > { %v795_v13 = vpop.f32.mrf.mxu1  ;;  %v747_v15 = vadd.f32 %v2685_v10, %v746_v12 }
  0xdf   : > { %v796_v16 = vadd.f32 %v795_v13, %v747_v15 }
  0xe1   : > { %v834_v18 = vmax.f32 %v796_v16, 0.0 }
  0xe3   : > { %v849_v19 = vpack.c.bf16 %v834_v18, %v833_v17 }
  0xe4   : > { %v749_v20 = vpop.f32.mrf.mxu0 }
  0xe5   : > { %v798_v21 = vpop.f32.mrf.mxu1  ;;  %933 = vmatmul.bf16.vlgmr.msra.gmra.mxu2 %v849_v19  ;;  %v750_v22 = vadd.f32 %v2685_v10, %v749_v20 }
  0xe7   : > { %v799_v25 = vadd.f32 %v798_v21, %v750_v22 }
  0xe9   : > { %v835_v28 = vmax.f32 %v799_v25, 0.0  ;;  %v2184_v25 = vld [vmem:[%s3196_s6 + $0x18] sm:$0xff] }
  0xea   : > { %1063 = vmatpush.bf16.msra.mxu3 %v2184_v25 }
  0xec   : > { %v751_v23 = vpop.f32.mrf.mxu0 }
  0xed   : > { %v800_v24 = vpop.f32.mrf.mxu1  ;;  %v752_v26 = vadd.f32 %v2685_v10, %v751_v23 }
  0xef   : > { %v801_v27 = vadd.f32 %v800_v24, %v752_v26 }
  0xf1   : > { %v836_v29 = vmax.f32 %v801_v27, 0.0  ;;  %v2183_v27 = vld [vmem:[%s3196_s6 + $0x10] sm:$0xff] }
  0xf2   : > { %1064 = vmatpush.bf16.msra.mxu3 %v2183_v27 }
  0xf3   : > { %v850_v30 = vpack.c.bf16 %v836_v29, %v835_v28 }
  0xf4   : > { %v754_v31 = vpop.f32.mrf.mxu0 }
  0xf5   : > { %v803_v32 = vpop.f32.mrf.mxu1  ;;  %938 = vmatmul.bf16.gmra.mxu2 %v850_v30  ;;  %v755_v33 = vadd.f32 %v2685_v10, %v754_v31 }
  0xf7   : > { %v804_v36 = vadd.f32 %v803_v32, %v755_v33  ;;  %v2182_v32 = vld [vmem:[%s3196_s6 + $0x8] sm:$0xff] }
  0xf8   : > { %1065 = vmatpush.bf16.msra.mxu3 %v2182_v32  ;;  %v2736_v32 = vld [vmem:[%s3197_s7] ss:$0 sm:$0xff] }
  0xf9   : > { %v837_v39 = vmax.f32 %v804_v36, 0.0  ;;  %v2181_v36 = vld [vmem:[%s3196_s6] sm:$0xff] }
  0xfc   : > { %v756_v34 = vpop.f32.mrf.mxu0  ;;  %1066 = vmatpush.bf16.msra.mxu3 %v2181_v36 }
  0xfd   : > { %v805_v35 = vpop.f32.mrf.mxu1  ;;  %v757_v37 = vadd.f32 %v2685_v10, %v756_v34 }
  0xff   : > { %v806_v38 = vadd.f32 %v805_v35, %v757_v37 }
 0x101   : > { %v838_v40 = vmax.f32 %v806_v38, 0.0 }
 0x103   : > { %v851_v41 = vpack.c.bf16 %v838_v40, %v837_v39 }
 0x104   : > { %v759_v42 = vpop.f32.mrf.mxu0 }
 0x105   : > { %v808_v43 = vpop.f32.mrf.mxu1  ;;  %943 = vmatmul.bf16.gmra.mxu2 %v851_v41  ;;  %v760_v44 = vadd.f32 %v2685_v10, %v759_v42 }
 0x107   : > { %v809_v47 = vadd.f32 %v808_v43, %v760_v44 }
 0x109   : > { %v839_v50 = vmax.f32 %v809_v47, 0.0 }
 0x10c   : > { %v761_v45 = vpop.f32.mrf.mxu0 }
 0x10d   : > { %v810_v46 = vpop.f32.mrf.mxu1  ;;  %v762_v48 = vadd.f32 %v2685_v10, %v761_v45 }
 0x10f   : > { %v811_v49 = vadd.f32 %v810_v46, %v762_v48 }
 0x111   : > { %v840_v51 = vmax.f32 %v811_v49, 0.0 }
 0x113   : > { %v852_v52 = vpack.c.bf16 %v840_v51, %v839_v50 }
 0x114   : > { %v764_v53 = vpop.f32.mrf.mxu0 }
 0x115   : > { %v813_v54 = vpop.f32.mrf.mxu1  ;;  %948 = vmatmul.bf16.gmra.mxu2 %v852_v52  ;;  %v765_v55 = vadd.f32 %v2685_v10, %v764_v53 }
 0x117   : > { %v814_v58 = vadd.f32 %v813_v54, %v765_v55 }
 0x119   : > { %v841_v61 = vmax.f32 %v814_v58, 0.0 }
 0x11c   : > { %v766_v56 = vpop.f32.mrf.mxu0 }
 0x11d   : > { %v815_v57 = vpop.f32.mrf.mxu1  ;;  %v767_v59 = vadd.f32 %v2685_v10, %v766_v56 }
 0x11f   : > { %v816_v60 = vadd.f32 %v815_v57, %v767_v59 }
 0x121   : > { %v842_v62 = vmax.f32 %v816_v60, 0.0 }
 0x123   : > { %v853_v63 = vpack.c.bf16 %v842_v62, %v841_v61 }
 0x124   : > { %v769_v0 = vpop.f32.mrf.mxu0 }
 0x125   : > { %v818_v1 = vpop.f32.mrf.mxu1  ;;  %953 = vmatmul.bf16.gmra.mxu2 %v853_v63  ;;  %v770_v2 = vadd.f32 %v2685_v10, %v769_v0 }
 0x127   : > { %v819_v5 = vadd.f32 %v818_v1, %v770_v2 }
 0x129   : > { %v843_v8 = vmax.f32 %v819_v5, 0.0 }
 0x12c   : > { %v771_v3 = vpop.f32.mrf.mxu0 }
 0x12d   : > { %v820_v4 = vpop.f32.mrf.mxu1  ;;  %v772_v6 = vadd.f32 %v2685_v10, %v771_v3 }
 0x12f   : > { %v821_v7 = vadd.f32 %v820_v4, %v772_v6 }
 0x131   : > { %v844_v9 = vmax.f32 %v821_v7, 0.0 }
 0x133   : > { %v854_v11 = vpack.c.bf16 %v844_v9, %v843_v8 }
 0x134   : > { %v774_v12 = vpop.f32.mrf.mxu0 }
 0x135   : > { %v823_v13 = vpop.f32.mrf.mxu1  ;;  %958 = vmatmul.bf16.gmra.mxu2 %v854_v11  ;;  %v775_v14 = vadd.f32 %v2685_v10, %v774_v12 }
 0x137   : > { %v824_v17 = vadd.f32 %v823_v13, %v775_v14 }
 0x139   : > { %v845_v20 = vmax.f32 %v824_v17, 0.0 }
 0x13c   : > { %v776_v15 = vpop.f32.mrf.mxu0 }
 0x13d   : > { %v825_v16 = vpop.f32.mrf.mxu1  ;;  %v777_v18 = vadd.f32 %v2685_v10, %v776_v15 }
 0x13f   : > { %v826_v19 = vadd.f32 %v825_v16, %v777_v18 }
 0x141   : > { %v846_v21 = vmax.f32 %v826_v19, 0.0 }
 0x143   : > { %v855_v22 = vpack.c.bf16 %v846_v21, %v845_v20 }
 0x144   : > { %v779_v23 = vpop.f32.mrf.mxu0 }
 0x145   : > { %v828_v24 = vpop.f32.mrf.mxu1  ;;  %963 = vmatmul.bf16.gmra.mxu2 %v855_v22  ;;  %v780_v26 = vadd.f32 %v2685_v10, %v779_v23 }
 0x147   : > { %v829_v29 = vadd.f32 %v828_v24, %v780_v26 }
 0x149   : > { %v847_v34 = vmax.f32 %v829_v29, 0.0 }
 0x14c   : > { %v781_v28 = vpop.f32.mrf.mxu0 }
 0x14d   : > { %v782_v30 = vadd.f32 %v2685_v10, %v781_v28  ;;  %v830_v31 = vpop.f32.mrf.mxu1  ;;  %v2261_v10 = vld [vmem:[%s3195_s5] ss:$0 sm:$0xff] }
 0x14f   : > { %v831_v33 = vadd.f32 %v830_v31, %v782_v30  ;;  %v2186_v31 = vld [vmem:[%s3198_s8 + $0x8] sm:$0xff] }
 0x150   : > { %1327 = vmatpush.bf16.msrb.mxu3 %v2186_v31 }
 0x151   : > { %v848_v35 = vmax.f32 %v831_v33, 0.0 }
 0x153   : > { %v856_v37 = vpack.c.bf16 %v848_v35, %v847_v34 }
 0x155   : > { %968 = vmatmul.bf16.gmra.mxu2 %v856_v37 }
 0x168   : > { %v934_v38 = vpop.f32.mrf.mxu2 }
 0x169   : > { %v935_v39 = vadd.f32 %v2261_v10, %v934_v38 }
 0x16b   : > { %v974_v42 = vmax.f32 %v935_v39, 0.0 }
 0x170   : > { %v936_v40 = vpop.f32.mrf.mxu2 }
 0x171   : > { %v937_v41 = vadd.f32 %v2261_v10, %v936_v40 }
 0x173   : > { %v975_v43 = vmax.f32 %v937_v41, 0.0 }
 0x175   : > { %v990_v44 = vpack.c.bf16 %v975_v43, %v974_v42 }
 0x177   : > { %2037 = vmatmul.msk.bf16.vlgmr.msra.gmra.mxu3 %vm1034_vm0, %v990_v44 }
 0x178   : > { %v939_v45 = vpop.f32.mrf.mxu2 }
 0x179   : > { %v940_v46 = vadd.f32 %v2261_v10, %v939_v45 }
 0x17b   : > { %v976_v49 = vmax.f32 %v940_v46, 0.0 }
 0x180   : > { %v941_v47 = vpop.f32.mrf.mxu2 }
 0x181   : > { %v942_v48 = vadd.f32 %v2261_v10, %v941_v47 }
 0x183   : > { %v977_v50 = vmax.f32 %v942_v48, 0.0 }
 0x185   : > { %v991_v51 = vpack.c.bf16 %v977_v50, %v976_v49 }
 0x187   : > { %2038 = vmatmul.msk.bf16.gmra.mxu3 %vm1034_vm0, %v991_v51 }
 0x188   : > { %v944_v52 = vpop.f32.mrf.mxu2 }
 0x189   : > { %v945_v53 = vadd.f32 %v2261_v10, %v944_v52 }
 0x18b   : > { %v978_v56 = vmax.f32 %v945_v53, 0.0 }
 0x190   : > { %v946_v54 = vpop.f32.mrf.mxu2 }
 0x191   : > { %v947_v55 = vadd.f32 %v2261_v10, %v946_v54 }
 0x193   : > { %v979_v57 = vmax.f32 %v947_v55, 0.0 }
 0x195   : > { %v992_v58 = vpack.c.bf16 %v979_v57, %v978_v56 }
 0x197   : > { %2039 = vmatmul.msk.bf16.gmra.mxu3 %vm1034_vm0, %v992_v58 }
 0x198   : > { %v949_v59 = vpop.f32.mrf.mxu2 }
 0x199   : > { %v950_v60 = vadd.f32 %v2261_v10, %v949_v59 }
 0x19b   : > { %v980_v63 = vmax.f32 %v950_v60, 0.0 }
 0x1a0   : > { %v951_v61 = vpop.f32.mrf.mxu2 }
 0x1a1   : > { %v952_v62 = vadd.f32 %v2261_v10, %v951_v61  ;;  %v2185_v61 = vld [vmem:[%s3198_s8] sm:$0xff] }
 0x1a2   : > { %1328 = vmatpush.bf16.msrb.mxu3 %v2185_v61 }
 0x1a3   : > { %v981_v0 = vmax.f32 %v952_v62, 0.0 }
 0x1a5   : > { %v993_v1 = vpack.c.bf16 %v981_v0, %v980_v63 }
 0x1a7   : > { %2040 = vmatmul.msk.bf16.gmra.mxu3 %vm1034_vm0, %v993_v1 }
 0x1a8   : > { %v954_v2 = vpop.f32.mrf.mxu2 }
 0x1a9   : > { %v955_v3 = vadd.f32 %v2261_v10, %v954_v2 }
 0x1ab   : > { %v982_v6 = vmax.f32 %v955_v3, 0.0 }
 0x1b0   : > { %v956_v4 = vpop.f32.mrf.mxu2 }
 0x1b1   : > { %v957_v5 = vadd.f32 %v2261_v10, %v956_v4 }
 0x1b3   : > { %v983_v7 = vmax.f32 %v957_v5, 0.0 }
 0x1b5   : > { %v994_v8 = vpack.c.bf16 %v983_v7, %v982_v6 }
 0x1b7   : > { %2041 = vmatmul.msk.bf16.gmra.mxu3 %vm1034_vm0, %v994_v8 }
 0x1b8   : > { %v959_v9 = vpop.f32.mrf.mxu2 }
 0x1b9   : > { %v960_v11 = vadd.f32 %v2261_v10, %v959_v9 }
 0x1bb   : > { %v984_v14 = vmax.f32 %v960_v11, 0.0 }
 0x1c0   : > { %v961_v12 = vpop.f32.mrf.mxu2 }
 0x1c1   : > { %v962_v13 = vadd.f32 %v2261_v10, %v961_v12 }
 0x1c3   : > { %v985_v15 = vmax.f32 %v962_v13, 0.0 }
 0x1c5   : > { %v995_v16 = vpack.c.bf16 %v985_v15, %v984_v14 }
 0x1c7   : > { %2042 = vmatmul.msk.bf16.gmra.mxu3 %vm1034_vm0, %v995_v16 }
 0x1c8   : > { %v964_v17 = vpop.f32.mrf.mxu2 }
 0x1c9   : > { %v965_v18 = vadd.f32 %v2261_v10, %v964_v17 }
 0x1cb   : > { %v986_v21 = vmax.f32 %v965_v18, 0.0 }
 0x1d0   : > { %v966_v19 = vpop.f32.mrf.mxu2 }
 0x1d1   : > { %v967_v20 = vadd.f32 %v2261_v10, %v966_v19 }
 0x1d3   : > { %v987_v22 = vmax.f32 %v967_v20, 0.0 }
 0x1d5   : > { %v996_v23 = vpack.c.bf16 %v987_v22, %v986_v21 }
 0x1d7   : > { %2043 = vmatmul.msk.bf16.gmra.mxu3 %vm1034_vm0, %v996_v23 }
 0x1d8   : > { %v969_v24 = vpop.f32.mrf.mxu2 }
 0x1d9   : > { %v970_v25 = vadd.f32 %v2261_v10, %v969_v24 }
 0x1db   : > { %v988_v28 = vmax.f32 %v970_v25, 0.0 }
 0x1e0   : > { %v971_v26 = vpop.f32.mrf.mxu2 }
 0x1e1   : > { %v972_v27 = vadd.f32 %v2261_v10, %v971_v26 }
 0x1e3   : > { %v989_v29 = vmax.f32 %v972_v27, 0.0 }
 0x1e5   : > { %v997_v30 = vpack.c.bf16 %v989_v29, %v988_v28 }
 0x1e7   : > { %2044 = vmatmul.msk.bf16.gmra.mxu3 %vm1034_vm0, %v997_v30 }
 0x1fa   : > { %v1068_v33 = vpop.f32.mrf.mxu3 }
 0x1fb   : > { %v2746_v34 = vadd.f32 %v2736_v32, %v1068_v33 }
 0x1fd   : > { %v1108_v35 = vmul.f32 0.5, %v2746_v34  ;;  %1759 = vst.msk [vmem:[%s2743_s28] sm:$0xff] %vm1034_vm0, %v2746_v34 }
 0x1ff   : > { %v1124_v36 = vmul.f32 1.442695, %v1108_v35 }
 0x201   : > { %2265 = vpow2.f32 %v1124_v36 }
 0x202   : > { %v1070_v37 = vpop.f32.mrf.mxu3 }
 0x203   : > { %v2753_v38 = vadd.f32 %v2736_v32, %v1070_v37 }
 0x205   : > { %v1109_v10 = vmul.f32 0.5, %v2753_v38  ;;  %1760 = vst.msk [vmem:[%s2743_s28 + $0x8] sm:$0xff] %vm1034_vm0, %v2753_v38 }
 0x207   : > { %v2266_v39 = vpop.eup %2265  ;;  %v1126_v40 = vmul.f32 1.442695, %v1109_v10 }
 0x208   : > { %1188 = vrot.lane.b32.xlu0 %v2266_v39, %s2397_s25 }
 0x209   : > { %2267 = vpow2.f32 %v1126_v40 }
 0x20a   : > { %v1073_v41 = vpop.f32.mrf.mxu3 }
 0x20b   : > { %v2761_v42 = vadd.f32 %v2736_v32, %v1073_v41 }
 0x20d   : > { %v1110_v43 = vmul.f32 0.5, %v2761_v42  ;;  %1761 = vst.msk [vmem:[%s2743_s28 + $0x10] sm:$0xff] %vm1034_vm0, %v2761_v42 }
 0x20f   : > { %v2268_v44 = vpop.eup %2267  ;;  %v1128_v45 = vmul.f32 1.442695, %v1110_v43 }
 0x210   : > { %1190 = vrot.lane.b32.xlu0 %v2268_v44, %s2397_s25 }
 0x211   : > { %2269 = vpow2.f32 %v1128_v45 }
 0x212   : > { %v1075_v46 = vpop.f32.mrf.mxu3 }
 0x213   : > { %v2769_v47 = vadd.f32 %v2736_v32, %v1075_v46 }
 0x215   : > { %v1111_v48 = vmul.f32 0.5, %v2769_v47  ;;  %1762 = vst.msk [vmem:[%s2743_s28 + $0x18] sm:$0xff] %vm1034_vm0, %v2769_v47 }
 0x217   : > { %v2270_v49 = vpop.eup %2269  ;;  %v1130_v50 = vmul.f32 1.442695, %v1111_v48 }
 0x218   : > { %1192 = vrot.lane.b32.xlu1 %v2270_v49, %s2397_s25 }
 0x219   : > { %2271 = vpow2.f32 %v1130_v50 }
 0x21a   : > { %v1078_v51 = vpop.f32.mrf.mxu3 }
 0x21b   : > { %v2777_v52 = vadd.f32 %v2736_v32, %v1078_v51 }
 0x21d   : > { %v1112_v53 = vmul.f32 0.5, %v2777_v52  ;;  %1763 = vst.msk [vmem:[%s2743_s28 + $0x20] sm:$0xff] %vm1034_vm0, %v2777_v52 }
 0x21f   : > { %v2272_v54 = vpop.eup %2271  ;;  %v1132_v55 = vmul.f32 1.442695, %v1112_v53 }
 0x220   : > { %1194 = vrot.lane.b32.xlu1 %v2272_v54, %s2397_s25  ;;  %v2190_v54 = vld [vmem:[%s3200_s10 + $0x18] sm:$0xff] }
 0x221   : > { %2273 = vpow2.f32 %v1132_v55  ;;  %1458 = vmatpush.bf16.msrb.mxu0 %v2190_v54 }
 0x222   : > { %v1080_v56 = vpop.f32.mrf.mxu3 }
 0x223   : > { %v2785_v57 = vadd.f32 %v2736_v32, %v1080_v56 }
 0x225   : > { %v1113_v58 = vmul.f32 0.5, %v2785_v57  ;;  %1764 = vst.msk [vmem:[%s2743_s28 + $0x28] sm:$0xff] %vm1034_vm0, %v2785_v57 }
 0x227   : > { %v2274_v59 = vpop.eup %2273  ;;  %v1134_v60 = vmul.f32 1.442695, %v1113_v58  ;;  %v1157_v58 = vld [vmem:[%s2883_s20 + $0x8] sm:$0xff] }
 0x228   : > { %1196 = vrot.lane.b32.xlu2 %v2274_v59, %s2397_s25 }
 0x229   : > { %2275 = vpow2.f32 %v1134_v60 }
 0x22a   : > { %v1083_v62 = vpop.f32.mrf.mxu3 }
 0x22b   : > { %v2796_v63 = vadd.f32 %v2736_v32, %v1083_v62 }
 0x22d   : > { %v1114_v0 = vmul.f32 0.5, %v2796_v63  ;;  %1765 = vst.msk [vmem:[%s2743_s28 + $0x30] sm:$0xff] %vm1034_vm0, %v2796_v63 }
 0x22f   : > { %v2276_v1 = vpop.eup %2275  ;;  %v1136_v2 = vmul.f32 1.442695, %v1114_v0 }
 0x230   : > { %1198 = vrot.lane.b32.xlu2 %v2276_v1, %s2397_s25 }
 0x231   : > { %2277 = vpow2.f32 %v1136_v2 }
 0x232   : > { %v1085_v3 = vpop.f32.mrf.mxu3 }
 0x233   : > { %v2804_v4 = vadd.f32 %v2736_v32, %v1085_v3  ;;  %v1158_v3 = vld [vmem:[%s2883_s20 + $0x10] sm:$0xff] }
 0x235   : > { %v1115_v5 = vmul.f32 0.5, %v2804_v4  ;;  %1766 = vst.msk [vmem:[%s2743_s28 + $0x38] sm:$0xff] %vm1034_vm0, %v2804_v4 }
 0x237   : > { %v2278_v6 = vpop.eup %2277  ;;  %v1138_v7 = vmul.f32 1.442695, %v1115_v5  ;;  %v1159_v5 = vld [vmem:[%s2883_s20 + $0x18] sm:$0xff] }
 0x238   : > { %1200 = vrot.lane.b32.xlu0 %v2278_v6, %s2397_s25 }
 0x239   : > { %2279 = vpow2.f32 %v1138_v7 }
 0x23a   : > { %v1088_v8 = vpop.f32.mrf.mxu3 }
 0x23b   : > { %v2812_v9 = vadd.f32 %v2736_v32, %v1088_v8 }
 0x23d   : > { %v1116_v11 = vmul.f32 0.5, %v2812_v9  ;;  %1767 = vst.msk [vmem:[%s2743_s28 + $0x40] sm:$0xff] %vm1034_vm0, %v2812_v9 }
 0x23f   : > { %v2280_v12 = vpop.eup %2279  ;;  %v1140_v13 = vmul.f32 1.442695, %v1116_v11 }
 0x240   : > { %1202 = vrot.lane.b32.xlu1 %v2280_v12, %s2397_s25 }
 0x241   : > { %2281 = vpow2.f32 %v1140_v13 }
 0x242   : > { %v1090_v14 = vpop.f32.mrf.mxu3 }
 0x243   : > { %v2820_v15 = vadd.f32 %v2736_v32, %v1090_v14 }
 0x245   : > { %v1117_v16 = vmul.f32 0.5, %v2820_v15  ;;  %1768 = vst.msk [vmem:[%s2743_s28 + $0x48] sm:$0xff] %vm1034_vm0, %v2820_v15 }
 0x247   : > { %v2282_v17 = vpop.eup %2281  ;;  %v1142_v18 = vmul.f32 1.442695, %v1117_v16  ;;  %v2189_v16 = vld [vmem:[%s3200_s10 + $0x10] sm:$0xff] }
 0x248   : > { %1204 = vrot.lane.b32.xlu2 %v2282_v17, %s2397_s25  ;;  %v1160_v17 = vld [vmem:[%s2883_s20 + $0x20] sm:$0xff]  ;;  %1459 = vmatpush.bf16.msrb.mxu0 %v2189_v16 }
 0x249   : > { %2283 = vpow2.f32 %v1142_v18 }
 0x24a   : > { %v1093_v19 = vpop.f32.mrf.mxu3 }
 0x24b   : > { %v2828_v20 = vadd.f32 %v2736_v32, %v1093_v19 }
 0x24d   : > { %v1118_v21 = vmul.f32 0.5, %v2828_v20  ;;  %1769 = vst.msk [vmem:[%s2743_s28 + $0x50] sm:$0xff] %vm1034_vm0, %v2828_v20 }
 0x24f   : > { %v2284_v22 = vpop.eup %2283  ;;  %v1144_v23 = vmul.f32 1.442695, %v1118_v21 }
 0x250   : > { %1206 = vrot.lane.b32.xlu0 %v2284_v22, %s2397_s25  ;;  %v1162_v22 = vld [vmem:[%s2883_s20 + $0x30] sm:$0xff] }
 0x251   : > { %2285 = vpow2.f32 %v1144_v23 }
 0x252   : > { %v1095_v24 = vpop.f32.mrf.mxu3 }
 0x253   : > { %v2836_v25 = vadd.f32 %v2736_v32, %v1095_v24  ;;  %v1163_v24 = vld [vmem:[%s2883_s20 + $0x38] sm:$0xff] }
 0x255   : > { %v1119_v26 = vmul.f32 0.5, %v2836_v25  ;;  %1770 = vst.msk [vmem:[%s2743_s28 + $0x58] sm:$0xff] %vm1034_vm0, %v2836_v25 }
 0x257   : > { %v2286_v27 = vpop.eup %2285  ;;  %v1146_v28 = vmul.f32 1.442695, %v1119_v26 }
 0x258   : > { %1208 = vrot.lane.b32.xlu1 %v2286_v27, %s2397_s25 }
 0x259   : > { %2287 = vpow2.f32 %v1146_v28 }
 0x25a   : > { %v1098_v29 = vpop.f32.mrf.mxu3 }
 0x25b   : > { %v2844_v30 = vadd.f32 %v2736_v32, %v1098_v29 }
 0x25d   : > { %v1120_v31 = vmul.f32 0.5, %v2844_v30  ;;  %1771 = vst.msk [vmem:[%s2743_s28 + $0x60] sm:$0xff] %vm1034_vm0, %v2844_v30 }
 0x25f   : > { %v2288_v33 = vpop.eup %2287  ;;  %v1148_v35 = vmul.f32 1.442695, %v1120_v31 }
 0x260   : > { %1210 = vrot.lane.b32.xlu2 %v2288_v33, %s2397_s25 }
 0x261   : > { %2289 = vpow2.f32 %v1148_v35 }
 0x262   : > { %v1100_v36 = vpop.f32.mrf.mxu3 }
 0x263   : > { %v2852_v37 = vadd.f32 %v2736_v32, %v1100_v36  ;;  %v1165_v36 = vld [vmem:[%s2883_s20 + $0x48] sm:$0xff] }
 0x265   : > { %v1121_v10 = vmul.f32 0.5, %v2852_v37  ;;  %1772 = vst.msk [vmem:[%s2743_s28 + $0x68] sm:$0xff] %vm1034_vm0, %v2852_v37 }
 0x267   : > { %v2290_v39 = vpop.eup %2289  ;;  %v1150_v40 = vmul.f32 1.442695, %v1121_v10 }
 0x268   : > { %1212 = vrot.lane.b32.xlu0 %v2290_v39, %s2397_s25 }
 0x269   : > { %2291 = vpow2.f32 %v1150_v40 }
 0x26a   : > { %v1103_v41 = vpop.f32.mrf.mxu3 }
 0x26b   : > { %v2860_v43 = vadd.f32 %v2736_v32, %v1103_v41 }
 0x26d   : > { %v1122_v44 = vmul.f32 0.5, %v2860_v43  ;;  %1773 = vst.msk [vmem:[%s2743_s28 + $0x70] sm:$0xff] %vm1034_vm0, %v2860_v43 }
 0x26f   : > { %v2292_v45 = vpop.eup %2291  ;;  %v1152_v46 = vmul.f32 1.442695, %v1122_v44  ;;  %v1166_v44 = vld [vmem:[%s2883_s20 + $0x50] sm:$0xff] }
 0x270   : > { %1214 = vrot.lane.b32.xlu1 %v2292_v45, %s2397_s25 }
 0x271   : > { %2293 = vpow2.f32 %v1152_v46  ;;  %v1167_v46 = vld [vmem:[%s2883_s20 + $0x58] sm:$0xff] }
 0x272   : > { %v1105_v48 = vpop.f32.mrf.mxu3 }
 0x273   : > { %v2868_v49 = vadd.f32 %v2736_v32, %v1105_v48  ;;  %v1156_v32 = vld [vmem:[%s2883_s20] sm:$0xff] }
 0x275   : > { %v1123_v50 = vmul.f32 0.5, %v2868_v49  ;;  %1774 = vst.msk [vmem:[%s2743_s28 + $0x78] sm:$0xff] %vm1034_vm0, %v2868_v49  ;;  %s1793_s28 = scalar_lea.hbm %s3232_s27, %s2208_s30 }
 0x276   : > { %s1796_s17 = sshll.u32 %s1793_s28, 4  ;;  %s1797_s17 = int_to_ptr.hbm [resolvable:$true] %s1796_s17 }
 0x277   : > { %v2294_v51 = vpop.eup %2293  ;;  %v1154_v53 = vmul.f32 1.442695, %v1123_v50  ;;  %s2341_s26 = sshra.s32 %s1797_s17, 4  ;;  %s2342_s26 = int_to_ptr.hbm [resolvable:$true] %s2341_s26 }
 0x278   : > { %1216 = vrot.lane.b32.xlu2 %v2294_v51, %s2397_s25  ;;  %p2348_p1 = scmp.lt.s32.totalorder %s2342_s26, %s3232_s27 }
 0x279   : > { %2295 = vpow2.f32 %v1154_v53 }
 0x27a   : > { %v1189_v55 = vpop.permute.xlu0 %1188 }
 0x27b   : > { %v1236_v59 = vmul.f32 %v1189_v55, %v1156_v32 }
 0x27d   : > { %v1252_v62 = vadd.f32 %v1236_v59, %v2746_v34 }
 0x27f   : > { %v2296_v56 = vpop.eup %2295 }
 0x280   : > { %1218 = vrot.lane.b32.xlu0 %v2296_v56, %s2397_s25  ;;  %v1169_v56 = vld [vmem:[%s2883_s20 + $0x68] sm:$0xff] }
 0x282   : > { %v1191_v60 = vpop.permute.xlu0 %1190  ;;  %v1197_v7 = vpop.permute.xlu2 %1196 }
 0x283   : > { %v1237_v61 = vmul.f32 %v1191_v60, %v1157_v58  ;;  %v1240_v19 = vmul.f32 %v1197_v7, %v1160_v17 }
 0x285   : > { %v1253_v0 = vadd.f32 %v1237_v61, %v2753_v38  ;;  %v1161_v38 = vld [vmem:[%s2883_s20 + $0x28] sm:$0xff] }
 0x287   : > { %v1268_v1 = vpack.c.bf16 %v1253_v0, %v1252_v62  ;;  %v1170_v62 = vld [vmem:[%s2883_s20 + $0x70] sm:$0xff] }
 0x289   : > { %2053 = vmatmul.msk.bf16.vlgmr.msrb.gmra.mxu3 %vm1296_vm1, %v1268_v1  ;;  %v1171_v1 = vld [vmem:[%s2883_s20 + $0x78] sm:$0xff] }
 0x28a   : > { %v1193_v2 = vpop.permute.xlu1 %1192  ;;  %v1199_v14 = vpop.permute.xlu2 %1198 }
 0x28b   : > { %v1238_v6 = vmul.f32 %v1193_v2, %v1158_v3  ;;  %v1241_v18 = vmul.f32 %v1199_v14, %v1161_v38 }
 0x28d   : > { %v1254_v12 = vadd.f32 %v1238_v6, %v2761_v42  ;;  %v1257_v21 = vadd.f32 %v1241_v18, %v2785_v57  ;;  %v1256_v42 = vadd.f32 %v1240_v19, %v2777_v52  ;;  %v2188_v52 = vld [vmem:[%s3200_s10 + $0x8] sm:$0xff]  ;;  %v1164_v57 = vld [vmem:[%s2883_s20 + $0x40] sm:$0xff] }
 0x28e   : > { %1460 = vmatpush.bf16.msrb.mxu0 %v2188_v52 }
 0x292   : > { %v1195_v8 = vpop.permute.xlu1 %1194 }
 0x293   : > { %v1239_v11 = vmul.f32 %v1195_v8, %v1159_v5 }
 0x295   : > { %v1255_v34 = vadd.f32 %v1239_v11, %v2769_v47  ;;  %v1270_v47 = vpack.c.bf16 %v1257_v21, %v1256_v42  ;;  %v2203_v21 = vld [vmem:[%s3202_s12 + $0x64] sm:$0xf]  ;;  %v2137_v42 = vld [vmem:[%s3202_s12 + $0x68] sm:$0xf0] }
 0x297   : > { %v1269_v13 = vpack.c.bf16 %v1255_v34, %v1254_v12  ;;  %v2206_v34 = vld [vmem:[%s3202_s12 + $0x74] sm:$0xf0] }
 0x299   : > { %2054 = vmatmul.msk.bf16.gmra.mxu3 %vm1296_vm1, %v1269_v13 }
 0x2a2   : > { %v1205_v35 = vpop.permute.xlu2 %1204 }
 0x2a3   : > { %v1244_v10 = vmul.f32 %v1205_v35, %v1164_v57  ;;  %v2201_v57 = vld [vmem:[%s3202_s12 + $0x54] sm:$0xf]  ;;  %v2129_v35 = vld [vmem:[%s3202_s12 + $0x58] sm:$0xf0] }
 0x2a9   : > { %2055 = vmatmul.msk.bf16.gmra.mxu3 %vm1296_vm1, %v1270_v47  ;;  %v2140_v47 = vor.u32 %v2203_v21, %v2137_v42 }
 0x2aa   : > { %v1201_v23 = vpop.permute.xlu0 %1200 }
 0x2ab   : > { %v1242_v26 = vmul.f32 %v1201_v23, %v1162_v22  ;;  %v2135_v23 = vld [vmem:[%s3202_s12 + $0x60] sm:$0xf] }
 0x2ad   : > { %v1258_v29 = vadd.f32 %v1242_v26, %v2796_v63  ;;  %v1260_v63 = vadd.f32 %v1244_v10, %v2812_v9  ;;  %v2187_v9 = vld [vmem:[%s3200_s10] sm:$0xff] }
 0x2ae   : > { %1461 = vmatpush.bf16.msrb.mxu0 %v2187_v9  ;;  %v2200_v9 = vld [vmem:[%s3202_s12 + $0x44] sm:$0xf0] }
 0x2b2   : > { %v1203_v27 = vpop.permute.xlu1 %1202 }
 0x2b3   : > { %v1243_v28 = vmul.f32 %v1203_v27, %v1163_v24  ;;  %v2204_v24 = vld [vmem:[%s3202_s12 + $0x64] sm:$0xf0] }
 0x2b4   : > { %v2136_v26 = vor.u32 %v2204_v24, %v2135_v23  ;;  %v2095_v24 = vld [vmem:[%s3202_s12 + $0x10] sm:$0xf] }
 0x2b5   : > { %v1259_v31 = vadd.f32 %v1243_v28, %v2804_v4 }
 0x2b7   : > { %v1271_v33 = vpack.c.bf16 %v1259_v31, %v1258_v29 }
 0x2b9   : > { %2056 = vmatmul.msk.bf16.gmra.mxu3 %vm1296_vm1, %v1271_v33 }
 0x2ba   : > { %v1211_v48 = vpop.permute.xlu2 %1210 }
 0x2bb   : > { %v1247_v51 = vmul.f32 %v1211_v48, %v1167_v46 }
 0x2bd   : > { %v1263_v54 = vadd.f32 %v1247_v51, %v2836_v25  ;;  %v2121_v51 = vld [vmem:[%s3202_s12 + $0x48] sm:$0xf0] }
 0x2c2   : > { %v1207_v39 = vpop.permute.xlu0 %1206 }
 0x2c3   : > { %v1245_v40 = vmul.f32 %v1207_v39, %v1165_v36  ;;  %v2132_v36 = vor.u32 %v2201_v57, %v2129_v35  ;;  %v2127_v39 = vld [vmem:[%s3202_s12 + $0x50] sm:$0xf] }
 0x2c5   : > { %v1261_v4 = vadd.f32 %v1245_v40, %v2820_v15  ;;  %v1168_v15 = vld [vmem:[%s2883_s20 + $0x60] sm:$0xff]  ;;  %v2202_v40 = vld [vmem:[%s3202_s12 + $0x54] sm:$0xf0]  ;;  %s3231_s20 = sld [smem:[#allocation16_spill]] }
 0x2c7   : > { %v1272_v41 = vpack.c.bf16 %v1261_v4, %v1260_v63  ;;  %v2128_v63 = vor.u32 %v2202_v40, %v2127_v39  ;;  %v2087_v40 = vld [vmem:[%s3202_s12] sm:$0xf] }
 0x2c9   : > { %2057 = vmatmul.msk.bf16.gmra.mxu3 %vm1296_vm1, %v1272_v41 }
 0x2ca   : > { %v1209_v45 = vpop.permute.xlu1 %1208 }
 0x2cb   : > { %v1246_v50 = vmul.f32 %v1209_v45, %v1166_v44 }
 0x2cd   : > { %v1262_v53 = vadd.f32 %v1246_v50, %v2828_v20  ;;  %v2199_v50 = vld [vmem:[%s3202_s12 + $0x44] sm:$0xf] }
 0x2cf   : > { %v1273_v55 = vpack.c.bf16 %v1263_v54, %v1262_v53  ;;  %v2124_v53 = vor.u32 %v2199_v50, %v2121_v51 }
 0x2d2   : > { %v1217_v0 = vpop.permute.xlu2 %1216 }
 0x2d3   : > { %v1250_v2 = vmul.f32 %v1217_v0, %v1170_v62 }
 0x2d5   : > { %v1266_v6 = vadd.f32 %v1250_v2, %v2860_v43  ;;  %v2944_v43 = vld [vmem:[%s3199_s9] ss:$0 sm:$0xff]  ;;  %v2198_v2 = vld [vmem:[%s3202_s12 + $0x34] sm:$0xf0] }
 0x2d9   : > { %2058 = vmatmul.msk.bf16.gmra.mxu3 %vm1296_vm1, %v1273_v55  ;;  %v2119_v55 = vld [vmem:[%s3202_s12 + $0x40] sm:$0xf] }
 0x2da   : > { %v1213_v32 = vpop.permute.xlu0 %1212 }
 0x2db   : > { %v1248_v58 = vmul.f32 %v1213_v32, %v1168_v15  ;;  %v2120_v15 = vor.u32 %v2200_v9, %v2119_v55 }
 0x2dd   : > { %v1264_v20 = vadd.f32 %v1248_v58, %v2844_v30  ;;  %v2205_v30 = vld [vmem:[%s3202_s12 + $0x74] sm:$0xf] }
 0x2e2   : > { %v1215_v59 = vpop.permute.xlu1 %1214 }
 0x2e3   : > { %v1249_v60 = vmul.f32 %v1215_v59, %v1169_v56 }
 0x2e5   : > { %v1265_v61 = vadd.f32 %v1249_v60, %v2852_v37  ;;  %v2145_v37 = vld [vmem:[%s3202_s12 + $0x78] sm:$0xf0] }
 0x2e6   : > { %v2148_v11 = vor.u32 %v2205_v30, %v2145_v37 }
 0x2e7   : > { %v1274_v25 = vpack.c.bf16 %v1265_v61, %v1264_v20  ;;  %v2197_v61 = vld [vmem:[%s3202_s12 + $0x34] sm:$0xf] }
 0x2e8   : > { %1678 = vmatpush.bf16.msrb.mxu2 %v2148_v11  ;;  %v2195_v11 = vld [vmem:[%s3202_s12 + $0x24] sm:$0xf] }
 0x2e9   : > { %2059 = vmatmul.msk.bf16.gmra.mxu3 %vm1296_vm1, %v1274_v25  ;;  %v2113_v25 = vld [vmem:[%s3202_s12 + $0x38] sm:$0xf0] }
 0x2ea   : > { %v2116_v62 = vor.u32 %v2197_v61, %v2113_v25 }
 0x2ec   : > { %1679 = vmatpush.bf16.msrb.mxu2 %v2140_v47  ;;  %v2193_v47 = vld [vmem:[%s3202_s12 + $0x14] sm:$0xf] }
 0x2f0   : > { %1680 = vmatpush.bf16.msrb.mxu2 %v2132_v36 }
 0x2f2   : > { %v1219_v3 = vpop.permute.xlu0 %1218 }
 0x2f3   : > { %v1251_v5 = vmul.f32 %v1219_v3, %v1171_v1  ;;  %v2111_v1 = vld [vmem:[%s3202_s12 + $0x30] sm:$0xf] }
 0x2f4   : > { %1681 = vmatpush.bf16.msrb.mxu2 %v2124_v53  ;;  %v2112_v3 = vor.u32 %v2198_v2, %v2111_v1 }
 0x2f5   : > { %v1267_v7 = vadd.f32 %v1251_v5, %v2868_v49  ;;  %v2143_v49 = vld [vmem:[%s3202_s12 + $0x70] sm:$0xf] }
 0x2f6   : > { %v2144_v13 = vor.u32 %v2206_v34, %v2143_v49 }
 0x2f7   : > { %v1275_v8 = vpack.c.bf16 %v1267_v7, %v1266_v6 }
 0x2f8   : > { %1629 = vmatpush.bf16.msrb.mxu1 %v2144_v13  ;;  %1682 = vmatpush.bf16.msrb.mxu2 %v2116_v62  ;;  %v2103_v13 = vld [vmem:[%s3202_s12 + $0x20] sm:$0xf] }
 0x2f9   : > { %2060 = vmatmul.msk.bf16.gmra.mxu3 %vm1296_vm1, %v1275_v8 }
 0x2fc   : > { %1630 = vmatpush.bf16.msrb.mxu1 %v2136_v26  ;;  %v2194_v26 = vld [vmem:[%s3202_s12 + $0x14] sm:$0xf0] }
 0x300   : > { %1631 = vmatpush.bf16.msrb.mxu1 %v2128_v63  ;;  %v2192_v63 = vld [vmem:[%s3202_s12 + $0x4] sm:$0xf0] }
 0x304   : > { %1632 = vmatpush.bf16.msrb.mxu1 %v2120_v15 }
 0x308   : > { %1633 = vmatpush.bf16.msrb.mxu1 %v2112_v3 }
 0x30c   : > { %v1330_v12 = vpop.f32.mrf.mxu3 }
 0x30d   : > { %v1331_v38 = vadd.f32 %v2944_v43, %v1330_v12  ;;  %v2105_v12 = vld [vmem:[%s3202_s12 + $0x28] sm:$0xf0] }
 0x30e   : > { %v2108_v49 = vor.u32 %v2195_v11, %v2105_v12 }
 0x30f   : > { %v1370_v17 = vmax.f32 %v1331_v38, 0.0  ;;  %v2196_v38 = vld [vmem:[%s3202_s12 + $0x24] sm:$0xf0] }
 0x310   : > { %1683 = vmatpush.bf16.msrb.mxu2 %v2108_v49 }
 0x314   : > { %v1332_v14 = vpop.f32.mrf.mxu3 }
 0x315   : > { %v1333_v16 = vadd.f32 %v2944_v43, %v1332_v14  ;;  %v2104_v14 = vor.u32 %v2196_v38, %v2103_v13 }
 0x317   : > { %v1371_v18 = vmax.f32 %v1333_v16, 0.0  ;;  %1634 = vmatpush.bf16.msrb.mxu1 %v2104_v14 }
 0x319   : > { %v1386_v19 = vpack.c.bf16 %v1371_v18, %v1370_v17 }
 0x31b   : > { %2077 = vmatmul.msk.bf16.vlgmr.msrb.gmra.mxu0 %vm1034_vm0, %v1386_v19 }
 0x31c   : > { %v1335_v22 = vpop.f32.mrf.mxu3 }
 0x31d   : > { %v1336_v27 = vadd.f32 %v2944_v43, %v1335_v22  ;;  %v2097_v22 = vld [vmem:[%s3202_s12 + $0x18] sm:$0xf0] }
 0x31e   : > { %v2100_v23 = vor.u32 %v2193_v47, %v2097_v22 }
 0x31f   : > { %v1372_v31 = vmax.f32 %v1336_v27, 0.0  ;;  %v2191_v27 = vld [vmem:[%s3202_s12 + $0x4] sm:$0xf] }
 0x320   : > { %1684 = vmatpush.bf16.msrb.mxu2 %v2100_v23 }
 0x324   : > { %v1337_v28 = vpop.f32.mrf.mxu3 }
 0x325   : > { %v1338_v29 = vadd.f32 %v2944_v43, %v1337_v28 }
 0x327   : > { %v1373_v33 = vmax.f32 %v1338_v29, 0.0  ;;  %v2096_v29 = vor.u32 %v2194_v26, %v2095_v24 }
 0x329   : > { %v1387_v52 = vpack.c.bf16 %v1373_v33, %v1372_v31  ;;  %v2089_v31 = vld [vmem:[%s3202_s12 + $0x8] sm:$0xf0]  ;;  %1635 = vmatpush.bf16.msrb.mxu1 %v2096_v29 }
 0x32a   : > { %v2092_v33 = vor.u32 %v2191_v27, %v2089_v31 }
 0x32b   : > { %2078 = vmatmul.msk.bf16.gmra.mxu0 %vm1034_vm0, %v1387_v52 }
 0x32c   : > { %v1340_v10 = vpop.f32.mrf.mxu3  ;;  %1685 = vmatpush.bf16.msrb.mxu2 %v2092_v33 }
 0x32d   : > { %v1341_v4 = vadd.f32 %v2944_v43, %v1340_v10 }
 0x32f   : > { %v1374_v45 = vmax.f32 %v1341_v4, 0.0 }
 0x334   : > { %v1342_v41 = vpop.f32.mrf.mxu3 }
 0x335   : > { %v1343_v44 = vadd.f32 %v2944_v43, %v1342_v41  ;;  %v2088_v41 = vor.u32 %v2192_v63, %v2087_v40 }
 0x337   : > { %v1375_v46 = vmax.f32 %v1343_v44, 0.0  ;;  %1636 = vmatpush.bf16.msrb.mxu1 %v2088_v41  ;;  %v1543_v41 = vld [vmem:[%s3231_s20] sm:$0x3]  ;;  %s2347_s20 = scalar_lea.hbm %s3232_s27, 512 }
 0x339   : > { %v1388_v48 = vpack.c.bf16 %v1375_v46, %v1374_v45 }
 0x33b   : > { %2079 = vmatmul.msk.bf16.gmra.mxu0 %vm1034_vm0, %v1388_v48 }
 0x33c   : > { %v1345_v54 = vpop.f32.mrf.mxu3 }
 0x33d   : > { %v1346_v32 = vadd.f32 %v2944_v43, %v1345_v54  ;;  %v3063_v54 = vld [vmem:[%s3230_s16] ss:$0 sm:$0xff]  ;;  %s2343_s16 = scalar_lea.hbm %s2342_s26, 256 }
 0x33e   : > { %p2344_p9 = scmp.ne.s32.totalorder %s2342_s26, %s2343_s16  ;;  %p2349_p3 = scmp.lt.s32.totalorder %s2347_s20, %s2343_s16 }
 0x33f   : > { %v1376_v59 = vmax.f32 %v1346_v32, 0.0 }
 0x340   : > { %p2345_p13 = pnand %p2344_p9, %p2530_p11  ;;  %p2350_p4 = por %p2349_p3, %p2348_p1 }
 0x342   : > { %p2346_p0 = pneg %p2345_p13 }
 0x344   : > { %v1347_v56 = vpop.f32.mrf.mxu3  ;;  %p2351_p7 = pnand %p2350_p4, %p2346_p0 }
 0x345   : > { %v1348_v58 = vadd.f32 %v2944_v43, %v1347_v56 }
 0x347   : > { %v1377_v60 = vmax.f32 %v1348_v58, 0.0 }
 0x349   : > { %v1389_v20 = vpack.c.bf16 %v1377_v60, %v1376_v59 }
 0x34b   : > { %2080 = vmatmul.msk.bf16.gmra.mxu0 %vm1034_vm0, %v1389_v20 }
 0x34c   : > { %v1350_v0 = vpop.f32.mrf.mxu3 }
 0x34d   : > { %v1351_v5 = vadd.f32 %v2944_v43, %v1350_v0 }
 0x34f   : > { %v1378_v8 = vmax.f32 %v1351_v5, 0.0 }
 0x354   : > { %v1352_v6 = vpop.f32.mrf.mxu3 }
 0x355   : > { %v1353_v7 = vadd.f32 %v2944_v43, %v1352_v6 }
 0x357   : > { %v1379_v30 = vmax.f32 %v1353_v7, 0.0 }
 0x359   : > { %v1390_v37 = vpack.c.bf16 %v1379_v30, %v1378_v8 }
 0x35b   : > { %2081 = vmatmul.msk.bf16.gmra.mxu0 %vm1034_vm0, %v1390_v37 }
 0x35c   : > { %v1355_v34 = vpop.f32.mrf.mxu3 }
 0x35d   : > { %v1356_v16 = vadd.f32 %v2944_v43, %v1355_v34 }
 0x35f   : > { %v1380_v19 = vmax.f32 %v1356_v16, 0.0 }
 0x364   : > { %v1357_v17 = vpop.f32.mrf.mxu3 }
 0x365   : > { %v1358_v18 = vadd.f32 %v2944_v43, %v1357_v17 }
 0x367   : > { %v1381_v21 = vmax.f32 %v1358_v18, 0.0 }
 0x369   : > { %v1391_v42 = vpack.c.bf16 %v1381_v21, %v1380_v19 }
 0x36b   : > { %2082 = vmatmul.msk.bf16.gmra.mxu0 %vm1034_vm0, %v1391_v42 }
 0x36c   : > { %v1360_v28 = vpop.f32.mrf.mxu3 }
 0x36d   : > { %v1361_v52 = vadd.f32 %v2944_v43, %v1360_v28 }
 0x36f   : > { %v1382_v36 = vmax.f32 %v1361_v52, 0.0 }
 0x374   : > { %v1362_v57 = vpop.f32.mrf.mxu3 }
 0x375   : > { %v1363_v35 = vadd.f32 %v2944_v43, %v1362_v57 }
 0x377   : > { %v1383_v10 = vmax.f32 %v1363_v35, 0.0 }
 0x379   : > { %v1392_v39 = vpack.c.bf16 %v1383_v10, %v1382_v36 }
 0x37b   : > { %2083 = vmatmul.msk.bf16.gmra.mxu0 %vm1034_vm0, %v1392_v39 }
 0x37c   : > { %v1365_v4 = vpop.f32.mrf.mxu3 }
 0x37d   : > { %v1366_v44 = vadd.f32 %v2944_v43, %v1365_v4 }
 0x37f   : > { %v1384_v48 = vmax.f32 %v1366_v44, 0.0  ;;  %v3084_v44 = vperm.slane %v1543_v41, 0 }
 0x384   : > { %v1367_v45 = vpop.f32.mrf.mxu3 }
 0x385   : > { %v1368_v46 = vadd.f32 %v2944_v43, %v1367_v45 }
 0x387   : > { %v1385_v50 = vmax.f32 %v1368_v46, 0.0 }
 0x389   : > { %v1393_v51 = vpack.c.bf16 %v1385_v50, %v1384_v48  ;;  %v3092_v48 = vperm.slane %v1543_v41, 1 }
 0x38b   : > { %2084 = vmatmul.msk.bf16.gmra.mxu0 %vm1034_vm0, %v1393_v51 }
 0x398   : > { %v1463_v53 = vpop.f32.mrf.mxu0 }
 0x399   : > { %v1464_v55 = vadd.f32 %v3063_v54, %v1463_v53 }
 0x39b   : > { %v1503_v32 = vmax.f32 %v1464_v55, 0.0 }
 0x3a0   : > { %v1465_v9 = vpop.f32.mrf.mxu0 }
 0x3a1   : > { %v1466_v15 = vadd.f32 %v3063_v54, %v1465_v9 }
 0x3a3   : > { %v1504_v56 = vmax.f32 %v1466_v15, 0.0 }
 0x3a5   : > { %v1519_v58 = vpack.c.bf16 %v1504_v56, %v1503_v32 }
 0x3a7   : > { %1637 = vmatmul.bf16.vlgmr.msrb.gmra.mxu1 %v1519_v58  ;;  %1686 = vmatmul.bf16.vlgmr.msrb.gmra.mxu2 %v1519_v58 }
 0x3a8   : > { %v1468_v43 = vpop.f32.mrf.mxu0 }
 0x3a9   : > { %v1469_v59 = vadd.f32 %v3063_v54, %v1468_v43 }
 0x3ab   : > { %v1505_v61 = vmax.f32 %v1469_v59, 0.0 }
 0x3b0   : > { %v1470_v60 = vpop.f32.mrf.mxu0 }
 0x3b1   : > { %v1471_v20 = vadd.f32 %v3063_v54, %v1470_v60 }
 0x3b3   : > { %v1506_v25 = vmax.f32 %v1471_v20, 0.0 }
 0x3b5   : > { %v1520_v62 = vpack.c.bf16 %v1506_v25, %v1505_v61 }
 0x3b7   : > { %1642 = vmatmul.bf16.gmra.mxu1 %v1520_v62  ;;  %1691 = vmatmul.bf16.gmra.mxu2 %v1520_v62 }
 0x3b8   : > { %v1473_v0 = vpop.f32.mrf.mxu0 }
 0x3b9   : > { %v1474_v1 = vadd.f32 %v3063_v54, %v1473_v0 }
 0x3bb   : > { %v1507_v5 = vmax.f32 %v1474_v1, 0.0 }
 0x3c0   : > { %v1475_v2 = vpop.f32.mrf.mxu0 }
 0x3c1   : > { %v1476_v3 = vadd.f32 %v3063_v54, %v1475_v2 }
 0x3c3   : > { %v1508_v6 = vmax.f32 %v1476_v3, 0.0 }
 0x3c5   : > { %v1521_v7 = vpack.c.bf16 %v1508_v6, %v1507_v5 }
 0x3c7   : > { %1647 = vmatmul.bf16.gmra.mxu1 %v1521_v7  ;;  %1696 = vmatmul.bf16.gmra.mxu2 %v1521_v7 }
 0x3c8   : > { %v1478_v8 = vpop.f32.mrf.mxu0 }
 0x3c9   : > { %v1479_v30 = vadd.f32 %v3063_v54, %v1478_v8 }
 0x3cb   : > { %v1509_v12 = vmax.f32 %v1479_v30, 0.0 }
 0x3d0   : > { %v1480_v37 = vpop.f32.mrf.mxu0 }
 0x3d1   : > { %v1481_v11 = vadd.f32 %v3063_v54, %v1480_v37 }
 0x3d3   : > { %v1510_v49 = vmax.f32 %v1481_v11, 0.0 }
 0x3d5   : > { %v1522_v34 = vpack.c.bf16 %v1510_v49, %v1509_v12 }
 0x3d7   : > { %1652 = vmatmul.bf16.gmra.mxu1 %v1522_v34  ;;  %1701 = vmatmul.bf16.gmra.mxu2 %v1522_v34 }
 0x3d8   : > { %v1483_v13 = vpop.f32.mrf.mxu0 }
 0x3d9   : > { %v1484_v38 = vadd.f32 %v3063_v54, %v1483_v13 }
 0x3db   : > { %v1511_v17 = vmax.f32 %v1484_v38, 0.0 }
 0x3e0   : > { %v1485_v14 = vpop.f32.mrf.mxu0 }
 0x3e1   : > { %v1486_v16 = vadd.f32 %v3063_v54, %v1485_v14 }
 0x3e3   : > { %v1512_v18 = vmax.f32 %v1486_v16, 0.0 }
 0x3e5   : > { %v1523_v19 = vpack.c.bf16 %v1512_v18, %v1511_v17 }
 0x3e7   : > { %1657 = vmatmul.bf16.gmra.mxu1 %v1523_v19  ;;  %1706 = vmatmul.bf16.gmra.mxu2 %v1523_v19 }
 0x3e8   : > { %v1488_v21 = vpop.f32.mrf.mxu0 }
 0x3e9   : > { %v1489_v42 = vadd.f32 %v3063_v54, %v1488_v21 }
 0x3eb   : > { %v1513_v23 = vmax.f32 %v1489_v42, 0.0 }
 0x3f0   : > { %v1490_v47 = vpop.f32.mrf.mxu0 }
 0x3f1   : > { %v1491_v22 = vadd.f32 %v3063_v54, %v1490_v47 }
 0x3f3   : > { %v1514_v24 = vmax.f32 %v1491_v22, 0.0 }
 0x3f5   : > { %v1524_v26 = vpack.c.bf16 %v1514_v24, %v1513_v23 }
 0x3f7   : > { %1662 = vmatmul.bf16.gmra.mxu1 %v1524_v26  ;;  %1711 = vmatmul.bf16.gmra.mxu2 %v1524_v26 }
 0x3f8   : > { %v1493_v27 = vpop.f32.mrf.mxu0 }
 0x3f9   : > { %v1494_v28 = vadd.f32 %v3063_v54, %v1493_v27 }
 0x3fb   : > { %v1515_v33 = vmax.f32 %v1494_v28, 0.0 }
 0x400   : > { %v1495_v29 = vpop.f32.mrf.mxu0 }
 0x401   : > { %v1496_v31 = vadd.f32 %v3063_v54, %v1495_v29 }
 0x403   : > { %v1516_v52 = vmax.f32 %v1496_v31, 0.0 }
 0x405   : > { %v1525_v57 = vpack.c.bf16 %v1516_v52, %v1515_v33 }
 0x407   : > { %1667 = vmatmul.bf16.gmra.mxu1 %v1525_v57  ;;  %1716 = vmatmul.bf16.gmra.mxu2 %v1525_v57 }
 0x408   : > { %v1498_v35 = vpop.f32.mrf.mxu0 }
 0x409   : > { %v1499_v36 = vadd.f32 %v3063_v54, %v1498_v35 }
 0x40b   : > { %v1517_v40 = vmax.f32 %v1499_v36, 0.0 }
 0x410   : > { %v1500_v10 = vpop.f32.mrf.mxu0 }
 0x411   : > { %v1501_v39 = vadd.f32 %v3063_v54, %v1500_v10 }
 0x413   : > { %v1518_v63 = vmax.f32 %v1501_v39, 0.0 }
 0x415   : > { %v1526_v4 = vpack.c.bf16 %v1518_v63, %v1517_v40 }
 0x417   : > { %1672 = vmatmul.bf16.gmra.mxu1 %v1526_v4  ;;  %1721 = vmatmul.bf16.gmra.mxu2 %v1526_v4 }
 0x424   : > { %v1638_v45 = vpop.f32.mrf.mxu1 }
 0x425   : > { %v1639_v46 = vadd.f32 %v1638_v45, %v3084_v44 }
 0x427   : > { %1727 = vst [vmem:[%s3089_s13] sm:$0xff] %v1639_v46 }
 0x42a   : > { %v1687_v50 = vpop.f32.mrf.mxu2 }
 0x42b   : > { %v1688_v51 = vadd.f32 %v1687_v50, %v3092_v48 }
 0x42c   : > { %v1640_v53 = vpop.f32.mrf.mxu1 }
 0x42d   : > { %1728 = vst [vmem:[%s3089_s13 + $0x8] sm:$0xff] %v1688_v51  ;;  %v1641_v54 = vadd.f32 %v1640_v53, %v3084_v44 }
 0x42f   : > { %1729 = vst [vmem:[%s3089_s13 + $0x10] sm:$0xff] %v1641_v54 }
 0x432   : > { %v1689_v55 = vpop.f32.mrf.mxu2 }
 0x433   : > { %v1690_v9 = vadd.f32 %v1689_v55, %v3092_v48 }
 0x434   : > { %v1643_v15 = vpop.f32.mrf.mxu1 }
 0x435   : > { %1730 = vst [vmem:[%s3089_s13 + $0x18] sm:$0xff] %v1690_v9  ;;  %v1644_v32 = vadd.f32 %v1643_v15, %v3084_v44 }
 0x437   : > { %1731 = vst [vmem:[%s3089_s13 + $0x20] sm:$0xff] %v1644_v32 }
 0x43a   : > { %v1692_v56 = vpop.f32.mrf.mxu2 }
 0x43b   : > { %v1693_v58 = vadd.f32 %v1692_v56, %v3092_v48 }
 0x43c   : > { %v1645_v43 = vpop.f32.mrf.mxu1 }
 0x43d   : > { %1732 = vst [vmem:[%s3089_s13 + $0x28] sm:$0xff] %v1693_v58  ;;  %v1646_v59 = vadd.f32 %v1645_v43, %v3084_v44 }
 0x43f   : > { %1733 = vst [vmem:[%s3089_s13 + $0x30] sm:$0xff] %v1646_v59 }
 0x442   : > { %v1694_v60 = vpop.f32.mrf.mxu2 }
 0x443   : > { %v1695_v20 = vadd.f32 %v1694_v60, %v3092_v48 }
 0x444   : > { %v1648_v61 = vpop.f32.mrf.mxu1 }
 0x445   : > { %1734 = vst [vmem:[%s3089_s13 + $0x38] sm:$0xff] %v1695_v20  ;;  %v1649_v25 = vadd.f32 %v1648_v61, %v3084_v44 }
 0x447   : > { %1735 = vst [vmem:[%s3089_s13 + $0x40] sm:$0xff] %v1649_v25 }
 0x44a   : > { %v1697_v62 = vpop.f32.mrf.mxu2 }
 0x44b   : > { %v1698_v0 = vadd.f32 %v1697_v62, %v3092_v48 }
 0x44c   : > { %v1650_v1 = vpop.f32.mrf.mxu1 }
 0x44d   : > { %1736 = vst [vmem:[%s3089_s13 + $0x48] sm:$0xff] %v1698_v0  ;;  %v1651_v2 = vadd.f32 %v1650_v1, %v3084_v44 }
 0x44f   : > { %1737 = vst [vmem:[%s3089_s13 + $0x50] sm:$0xff] %v1651_v2 }
 0x452   : > { %v1699_v3 = vpop.f32.mrf.mxu2 }
 0x453   : > { %v1700_v5 = vadd.f32 %v1699_v3, %v3092_v48 }
 0x454   : > { %v1653_v6 = vpop.f32.mrf.mxu1 }
 0x455   : > { %1738 = vst [vmem:[%s3089_s13 + $0x58] sm:$0xff] %v1700_v5  ;;  %v1654_v7 = vadd.f32 %v1653_v6, %v3084_v44 }
 0x457   : > { %1739 = vst [vmem:[%s3089_s13 + $0x60] sm:$0xff] %v1654_v7 }
 0x45a   : > { %v1702_v8 = vpop.f32.mrf.mxu2 }
 0x45b   : > { %v1703_v30 = vadd.f32 %v1702_v8, %v3092_v48 }
 0x45c   : > { %v1655_v37 = vpop.f32.mrf.mxu1 }
 0x45d   : > { %1740 = vst [vmem:[%s3089_s13 + $0x68] sm:$0xff] %v1703_v30  ;;  %v1656_v11 = vadd.f32 %v1655_v37, %v3084_v44 }
 0x45f   : > { %1741 = vst [vmem:[%s3089_s13 + $0x70] sm:$0xff] %v1656_v11 }
 0x462   : > { %v1704_v12 = vpop.f32.mrf.mxu2 }
 0x463   : > { %v1705_v49 = vadd.f32 %v1704_v12, %v3092_v48 }
 0x464   : > { %v1658_v34 = vpop.f32.mrf.mxu1 }
 0x465   : > { %1742 = vst [vmem:[%s3089_s13 + $0x78] sm:$0xff] %v1705_v49  ;;  %v1659_v13 = vadd.f32 %v1658_v34, %v3084_v44 }
 0x467   : > { %1743 = vst [vmem:[%s3089_s13 + $0x80] sm:$0xff] %v1659_v13 }
 0x46a   : > { %v1707_v38 = vpop.f32.mrf.mxu2 }
 0x46b   : > { %v1708_v14 = vadd.f32 %v1707_v38, %v3092_v48 }
 0x46c   : > { %v1660_v16 = vpop.f32.mrf.mxu1 }
 0x46d   : > { %1744 = vst [vmem:[%s3089_s13 + $0x88] sm:$0xff] %v1708_v14  ;;  %v1661_v17 = vadd.f32 %v1660_v16, %v3084_v44 }
 0x46f   : > { %1745 = vst [vmem:[%s3089_s13 + $0x90] sm:$0xff] %v1661_v17 }
 0x472   : > { %v1709_v18 = vpop.f32.mrf.mxu2 }
 0x473   : > { %v1710_v19 = vadd.f32 %v1709_v18, %v3092_v48 }
 0x474   : > { %v1663_v21 = vpop.f32.mrf.mxu1 }
 0x475   : > { %1746 = vst [vmem:[%s3089_s13 + $0x98] sm:$0xff] %v1710_v19  ;;  %v1664_v42 = vadd.f32 %v1663_v21, %v3084_v44 }
 0x477   : > { %1747 = vst [vmem:[%s3089_s13 + $0xa0] sm:$0xff] %v1664_v42 }
 0x47a   : > { %v1712_v47 = vpop.f32.mrf.mxu2 }
 0x47b   : > { %v1713_v22 = vadd.f32 %v1712_v47, %v3092_v48 }
 0x47c   : > { %v1665_v23 = vpop.f32.mrf.mxu1 }
 0x47d   : > { %1748 = vst [vmem:[%s3089_s13 + $0xa8] sm:$0xff] %v1713_v22  ;;  %v1666_v24 = vadd.f32 %v1665_v23, %v3084_v44 }
 0x47f   : > { %1749 = vst [vmem:[%s3089_s13 + $0xb0] sm:$0xff] %v1666_v24 }
 0x482   : > { %v1714_v26 = vpop.f32.mrf.mxu2 }
 0x483   : > { %v1715_v27 = vadd.f32 %v1714_v26, %v3092_v48 }
 0x484   : > { %v1668_v28 = vpop.f32.mrf.mxu1 }
 0x485   : > { %1750 = vst [vmem:[%s3089_s13 + $0xb8] sm:$0xff] %v1715_v27  ;;  %v1669_v29 = vadd.f32 %v1668_v28, %v3084_v44 }
 0x487   : > { %1751 = vst [vmem:[%s3089_s13 + $0xc0] sm:$0xff] %v1669_v29 }
 0x48a   : > { %v1717_v31 = vpop.f32.mrf.mxu2 }
 0x48b   : > { %v1718_v33 = vadd.f32 %v1717_v31, %v3092_v48 }
 0x48c   : > { %v1670_v52 = vpop.f32.mrf.mxu1 }
 0x48d   : > { %1752 = vst [vmem:[%s3089_s13 + $0xc8] sm:$0xff] %v1718_v33  ;;  %v1671_v57 = vadd.f32 %v1670_v52, %v3084_v44 }
 0x48f   : > { %1753 = vst [vmem:[%s3089_s13 + $0xd0] sm:$0xff] %v1671_v57 }
 0x492   : > { %v1719_v35 = vpop.f32.mrf.mxu2 }
 0x493   : > { %v1720_v36 = vadd.f32 %v1719_v35, %v3092_v48 }
 0x494   : > { %v1673_v10 = vpop.f32.mrf.mxu1 }
 0x495   : > { %1754 = vst [vmem:[%s3089_s13 + $0xd8] sm:$0xff] %v1720_v36  ;;  %v1674_v39 = vadd.f32 %v1673_v10, %v3084_v44 }
 0x497   : > { %1755 = vst [vmem:[%s3089_s13 + $0xe0] sm:$0xff] %v1674_v39 }
 0x49a   : > { %v1722_v40 = vpop.f32.mrf.mxu2 }
 0x49b   : > { %v1723_v63 = vadd.f32 %v1722_v40, %v3092_v48 }
 0x49c   : > { %v1675_v4 = vpop.f32.mrf.mxu1 }
 0x49d   : > { %1756 = vst [vmem:[%s3089_s13 + $0xe8] sm:$0xff] %v1723_v63  ;;  %v1676_v41 = vadd.f32 %v1675_v4, %v3084_v44 }
 0x49f   : > { %1757 = vst [vmem:[%s3089_s13 + $0xf0] sm:$0xff] %v1676_v41 }
 0x4a2   : > { %v1724_v45 = vpop.f32.mrf.mxu2 }
 0x4a3   : > { %v1725_v46 = vadd.f32 %v1724_v45, %v3092_v48 }
 0x4a5   : > { %1758 = vst [vmem:[%s3089_s13 + $0xf8] sm:$0xff] %v1725_v46 }
 0x4a6   : > { %2354 = shalt.err (!%p2351_p7)
}
 0x4a7   : > { %s2398_s23 = smov 256   ;;  %s2399_s13 = smov 16  }
 0x4a8   : > { %2211 = dma.vmem_to_hbm [thread:$0]  (%p2530_p11), %s1795_s29, 4096, %s1797_s17, %s1776_s22, %s2398_s23, %s2398_s23, %s2399_s13  }
 0x4a9 PF: > { %s3234_s24 = sld [smem:[#allocation8_spill]]  ;;  %p3236_p5 = scmp.ge.s32.totalorder %s2393_s21, 2 }
 0x4ab   : > { %p2218_p8 = pnand %p3236_p5, %p2534_p12 }
 0x4ad   : > { %p2219_p10 = pneg %p2218_p8 }
 0x4af   : > { %s1815_s0 = sand.u32 1, %s3234_s24  }
 0x4b0   : > { %s1816_s11 = scalar_lea.sflag [#allocation4], %s1815_s0 }
 0x4b1   : > { %2376 = dma.done.wait (%p2219_p10), %s1816_s11, 4096  }
 0x4b2   : > { %2378 = vsyncadd (%p2219_p10), %s1816_s11, 4294963200  ;;  %s3237_s21 = sld [smem:[#allocation10_spill]]  ;;  %s3240_s18 = smov %s2385_s19 }
 0x4b3   : > { %s3238_s26 = sld [smem:[#allocation9_spill]] }
 0x4b4   : > { %s3239_s20 = sld [smem:[#allocation11_spill]] }
 0x4b8   : > { %p29_p2 = scmp.ge.s32.totalorder %s3237_s21, 4  }
 0x4b9   : > { %s3241_s19 = smov %s3238_s26 }
 0x4ba   :  { %31 = sbr.rel (!%p29_p2) target bundleno = 10 (0xa), region = 136 }
 0x4bf   :  { %1830 = vsyncpa [#allocation3], 1 }
 0x4c0   :  { %1832 = vsyncpa [#allocation3 + $0x1], 1 }
 0x4c1   :  { %1833 = vsyncpa [#allocation4], 1 }
 0x4c2   :  { %1835 = vsyncpa [#allocation4 + $0x1], 1 }

</bundles_post_ra>
